<compile_context>
chip_gen: v7x
topology: tpu7x:2x2x1
jax: 0.10.0
libtpu: 0.0.40
codegen_flags: <defaults>
</compile_context>

<pallas_src>
import functools

import jax
import jax.numpy as jnp
from jax import lax
from jax.experimental import pallas as pl
from jax.experimental.pallas import tpu as pltpu


def _round_up(n, m=128):
    return ((n + m - 1) // m) * m


def _pad_cols(a, to):
    pad = to - a.shape[-1]
    if pad <= 0:
        return a
    return jnp.pad(a, [(0, 0)] * (a.ndim - 1) + [(0, pad)])


def _tpu_generation():
    """Best-effort TPU generation from device_kind (0 if unknown)."""
    try:
        kind = jax.devices()[0].device_kind.lower()
    except Exception:
        return 0
    for g in (7, 6, 5, 4, 3, 2):
        if (f"v{g}" in kind) or (f"tpu{g}" in kind):
            return g
    return 0


def _choose_tile_rows(H, W, stride, chid_p, cdt_bytes, vmem_budget):
    """Largest row tile (divisor of H) whose hidden-channel working set fits."""
    per_row = chid_p * (3 * 4 + 6 * cdt_bytes)   # f32 temporaries + cdt copies
    candidates = [d for d in range(H, 0, -1)
                  if H % d == 0 and d % stride == 0
                  and ((d // stride) * (W // stride)) % 8 == 0]
    for d in candidates:
        if (d + 2) * W * per_row <= vmem_budget:
            return d
    return candidates[-1] if candidates else H


def _inverted_residual_kernel(x_ref, w_exp_ref, b_exp_ref, w_dw_ref, b_dw_ref,
                              w_pr_ref, b_pr_ref, o_ref, *,
                              W, TH, stride, use_res_connect, compute_dtype):
    # x_ref     : ((TH+2)*W, Cin)  bf16 halo'd row tile (1 halo row above/below)
    # w_exp_ref : (Cin, Chid_p)    folded expand conv * BN scale, bf16
    # b_exp_ref : (1, Chid_p)      folded BN bias, f32
    # w_dw_ref  : (9, Chid_p)      folded depthwise taps (row = kh*3+kw), cdt
    # b_dw_ref  : (1, Chid_p)      cdt
    # w_pr_ref  : (Chid_p, Cout)   folded project conv * BN scale, bf16
    # b_pr_ref  : (1, Cout)        f32
    # o_ref     : ((TH//s)*(W//s), Cout)
    cdt = compute_dtype
    Mw = (TH + 2) * W

    x_win = x_ref[...]                                    # bf16, halo'd window

    # --- 1) pointwise expand (1x1 conv == MXU matmul) + BN + ReLU (f32 acc) --
    h32 = jnp.dot(x_win, w_exp_ref[...], preferred_element_type=jnp.float32)
    h32 = jnp.maximum(h32 + b_exp_ref[...], 0.0)

    # --- 2) 3x3 depthwise conv, padding=1 ------------------------------------
    # Column neighbours: two f32 sublane rolls (XLU), each masked ONCE with a
    # hoisted column mask.  Row neighbours: the halo rows supply real data at
    # tile boundaries and zeros at image borders, so no row masks are needed;
    # the +-W row shift is a vreg-aligned slice + concat of the tap-combined
    # data (wrap/zero rows only land in the discarded halo output rows).
    col = lax.broadcasted_iota(jnp.int32, (Mw, 1), 0) % W
    has_l = col >= 1
    has_r = col <= W - 2
    hl = jnp.where(has_l, pltpu.roll(h32, shift=1, axis=0), 0.0)       # col-1
    hr = jnp.where(has_r, pltpu.roll(h32, shift=Mw - 1, axis=0), 0.0)  # col+1

    h = h32.astype(cdt)
    hl = hl.astype(cdt)
    hr = hr.astype(cdt)
    w_dw = w_dw_ref[...]                         # taps hoisted, stay in vregs

    top = w_dw[0:1] * hl + w_dw[1:2] * h + w_dw[2:3] * hr   # taps of row r-1
    mid = w_dw[3:4] * hl + w_dw[4:5] * h + w_dw[5:6] * hr   # taps of row r
    bot = w_dw[6:7] * hl + w_dw[7:8] * h + w_dw[8:9] * hr   # taps of row r+1

    zrows = jnp.zeros((W,) + top.shape[1:], cdt)
    acc = (mid
           + jnp.concatenate([zrows, top[:Mw - W, :]], axis=0)   # src row r-1
           + jnp.concatenate([bot[W:, :], zrows], axis=0))       # src row r+1

    dw = jnp.maximum(acc[W:W + TH * W, :] + b_dw_ref[...], 0.0)  # drop halo rows

    if stride > 1:
        # TODO(synk): compute only the strided output positions instead of the
        # full stride-1 depthwise + subsample (stride>1 not exercised here).
        Ch = dw.shape[-1]
        dw = dw.reshape(TH, W, Ch)[::stride, ::stride, :].reshape(-1, Ch)

    # --- 3) pointwise project (1x1 conv) + BN, no ReLU (bf16 MXU) ------------
    y = jnp.dot(dw.astype(jnp.bfloat16), w_pr_ref[...],
                preferred_element_type=jnp.float32) + b_pr_ref[...]

    if use_res_connect:
        y = y + x_win[W:W + TH * W, :].astype(jnp.float32)       # f32 residual
    o_ref[...] = y.astype(o_ref.dtype)


def _fold_bn(gamma, beta, mean, var, eps=1e-5):
    scale = gamma / jnp.sqrt(var + eps)
    bias = beta - mean * scale
    return scale, bias


def inverted_residual_forward(x_nchw, params, *, inp, oup, stride, expand_ratio,
                              rows_per_tile=None, out_dtype=jnp.float32):
    """x_nchw: (N, inp, H, W) float32 -> (N, oup, Ho, Wo) float32."""
    hidden = int(inp * expand_ratio)
    use_res_connect = (stride == 1 and inp == oup)
    N, C, H, W = x_nchw.shape
    assert C == inp
    assert W % 8 == 0, "W must be a multiple of 8 (sublane alignment)"
    assert H % stride == 0 and W % stride == 0
    Ho, Wo = H // stride, W // stride

    gen = _tpu_generation()
    # bf16 VALU exists on v6e/v7x -> bf16 depthwise there; f32 on v5e/older.
    compute_dtype = jnp.bfloat16 if gen >= 6 else jnp.float32
    Chid_p = _round_up(hidden, 128)              # lane-dense hidden channels

    if rows_per_tile is None:
        vmem_budget = (20 << 20) if gen >= 7 else (48 << 20)
        rows_per_tile = _choose_tile_rows(H, W, stride, Chid_p,
                                          jnp.dtype(compute_dtype).itemsize,
                                          vmem_budget)
    TH = rows_per_tile
    assert H % TH == 0 and TH % stride == 0
    T = H // TH
    TH_o = TH // stride
    assert (TH_o * Wo) % 8 == 0

    # --- activations: bf16, real channel count, halo row above/below each tile
    x_nhwc = jnp.transpose(x_nchw, (0, 2, 3, 1)).astype(jnp.bfloat16)
    tiles = x_nhwc.reshape(N, T, TH, W, inp)
    zrow = jnp.zeros((N, 1, W, inp), jnp.bfloat16)
    tops = jnp.concatenate([zrow, x_nhwc[:, TH - 1:H - 1:TH]], axis=1)[:, :, None]
    bots = jnp.concatenate([x_nhwc[:, TH:H:TH], zrow], axis=1)[:, :, None]
    x_win = jnp.concatenate([tops, tiles, bots], axis=2)     # (N, T, TH+2, W, C)
    x_win = x_win.reshape(N * T * (TH + 2) * W, inp)

    # --- fold eval-mode BatchNorm into the conv weights ----------------------
    s_exp, b_exp = _fold_bn(*params["bn1"])
    w_exp = params["w_exp"][:, :, 0, 0].T * s_exp[None, :]        # (inp, hidden)
    w_exp = _pad_cols(w_exp, Chid_p).astype(jnp.bfloat16)
    b_exp = _pad_cols(b_exp[None, :], Chid_p)                      # f32

    s_dw, b_dw = _fold_bn(*params["bn2"])
    w_dw = jnp.transpose(params["w_dw"][:, 0, :, :], (1, 2, 0))    # (3,3,hidden)
    w_dw = (w_dw * s_dw[None, None, :]).reshape(9, hidden)
    w_dw = _pad_cols(w_dw, Chid_p).astype(compute_dtype)
    b_dw = _pad_cols(b_dw[None, :], Chid_p).astype(compute_dtype)

    s_pr, b_pr = _fold_bn(*params["bn3"])
    w_pr = params["w_pr"][:, :, 0, 0].T * s_pr[None, :]            # (hidden, oup)
    w_pr = jnp.pad(w_pr, ((0, Chid_p - hidden), (0, 0))).astype(jnp.bfloat16)
    b_pr = b_pr[None, :]                                           # (1, oup) f32

    kernel = functools.partial(
        _inverted_residual_kernel, W=W, TH=TH, stride=stride,
        use_res_connect=use_res_connect, compute_dtype=compute_dtype)

    # Raise the scoped VMEM limit (defaults: 16 MiB v5e, 32 MiB v6e/v7x).
    vmem_limit = (48 << 20) if gen >= 7 else ((100 << 20) if gen >= 5 else None)

    out_flat = pl.pallas_call(
        kernel,
        out_shape=jax.ShapeDtypeStruct((N * Ho * Wo, oup), out_dtype),
        grid=(N, T),
        in_specs=[
            pl.BlockSpec(((TH + 2) * W, inp), lambda n, t: (n * T + t, 0)),
            pl.BlockSpec((inp, Chid_p), lambda n, t: (0, 0)),
            pl.BlockSpec((1, Chid_p), lambda n, t: (0, 0)),
            pl.BlockSpec((9, Chid_p), lambda n, t: (0, 0)),
            pl.BlockSpec((1, Chid_p), lambda n, t: (0, 0)),
            pl.BlockSpec((Chid_p, oup), lambda n, t: (0, 0)),
            pl.BlockSpec((1, oup), lambda n, t: (0, 0)),
        ],
        out_specs=pl.BlockSpec((TH_o * Wo, oup), lambda n, t: (n * T + t, 0)),
        compiler_params=pltpu.CompilerParams(
            dimension_semantics=("parallel", "parallel"),
            vmem_limit_bytes=vmem_limit),
    )(x_win, w_exp, b_exp, w_dw, b_dw, w_pr, b_pr)

    out = out_flat.reshape(N, Ho, Wo, oup).astype(jnp.float32)
    return jnp.transpose(out, (0, 3, 1, 2))                        # back to NCHW


# ----------------------- pure-JAX reference (NCHW, like PyTorch) ---------------
def ref_forward(x, params, *, stride, use_res_connect, eps=1e-5):
    def bn(y, g, b, m, v):
        g, b, m, v = (t[None, :, None, None] for t in (g, b, m, v))
        return g * (y - m) / jnp.sqrt(v + eps) + b

    dn = ("NCHW", "OIHW", "NCHW")
    hidden = params["w_exp"].shape[0]

    y = lax.conv_general_dilated(x, params["w_exp"], (1, 1), "VALID",
                                 dimension_numbers=dn)
    y = jnp.maximum(bn(y, *params["bn1"]), 0.0)
    y = lax.conv_general_dilated(y, params["w_dw"], (stride, stride),
                                 ((1, 1), (1, 1)), dimension_numbers=dn,
                                 feature_group_count=hidden)
    y = jnp.maximum(bn(y, *params["bn2"]), 0.0)
    y = lax.conv_general_dilated(y, params["w_pr"], (1, 1), "VALID",
                                 dimension_numbers=dn)
    y = bn(y, *params["bn3"])
    return x + y if use_res_connect else y


def init_params(key, inp, oup, expand_ratio):
    hidden = int(inp * expand_ratio)
    ks = jax.random.split(key, 12)

    def bn_params(k, c):
        k1, k2, k3, k4 = jax.random.split(k, 4)
        gamma = jax.random.uniform(k1, (c,), jnp.float32, 0.5, 1.5)
        beta = 0.1 * jax.random.normal(k2, (c,), jnp.float32)
        mean = 0.1 * jax.random.normal(k3, (c,), jnp.float32)
        var = jax.random.uniform(k4, (c,), jnp.float32, 0.5, 1.5)
        return (gamma, beta, mean, var)

    return {
        "w_exp": 0.3 * jax.random.normal(ks[0], (hidden, inp, 1, 1), jnp.float32),
        "bn1": bn_params(ks[1], hidden),
        "w_dw": 0.3 * jax.random.normal(ks[2], (hidden, 1, 3, 3), jnp.float32),
        "bn2": bn_params(ks[3], hidden),
        "w_pr": 0.3 * jax.random.normal(ks[4], (oup, hidden, 1, 1), jnp.float32),
        "bn3": bn_params(ks[5], oup),
    }


if __name__ == "__main__":
    # InvertedResidual(inp=4, oup=4, stride=1, expand_ratio=2)  -> hidden = 8
    N, inp, H, W = 2, 4, 16, 16
    oup, stride, expand_ratio = 4, 1, 2

    key = jax.random.PRNGKey(0)
    params = init_params(key, inp, oup, expand_ratio)
    x = jax.random.normal(jax.random.fold_in(key, 99), (N, inp, H, W), jnp.float32)

    # rows_per_tile=8 -> 2 row tiles per image: exercises the halo'd spatial
    # tiling path and yields a (2, 2) fully "parallel" grid (both v7x TCs busy).
    out = inverted_residual_forward(x, params, inp=inp, oup=oup, stride=stride,
                                    expand_ratio=expand_ratio, rows_per_tile=8)
    out = jax.block_until_ready(out)

    ref = ref_forward(x, params, stride=stride,
                      use_res_connect=(stride == 1 and inp == oup))
    assert out.shape == ref.shape == (N, oup, H // stride, W // stride)
    # bf16 inputs / MXU operands (f32 accumulate) -> looser tolerance than f32.
    max_err = float(jnp.max(jnp.abs(out - ref)))
    if not bool(jnp.allclose(out, ref, atol=5e-2, rtol=5e-2)):
        raise AssertionError(f"Pallas kernel mismatch vs reference (max abs err {max_err:.4g})")
    print("KERNEL_OK")
</pallas_src>

<mosaic_0001>
module attributes {stable_mosaic.version = 11 : i64} {
  func.func @_inverted_residual_kernel(%arg0: i32, %arg1: i32, %arg2: memref<160x4xbf16, #tpu.memory_space<vmem>>, %arg3: memref<4x128xbf16, #tpu.memory_space<vmem>>, %arg4: memref<1x128xf32, #tpu.memory_space<vmem>>, %arg5: memref<9x128xf32, #tpu.memory_space<vmem>>, %arg6: memref<1x128xf32, #tpu.memory_space<vmem>>, %arg7: memref<128x4xbf16, #tpu.memory_space<vmem>>, %arg8: memref<1x4xf32, #tpu.memory_space<vmem>>, %arg9: memref<128x4xf32, #tpu.memory_space<vmem>>) attributes {dimension_semantics = [#tpu.dimension_semantics<parallel>, #tpu.dimension_semantics<parallel>], iteration_bounds = array<i64: 2, 2>, scalar_prefetch = 0 : i64, scratch_operands = 0 : i64, tpu.core_type = #tpu.core_type<tc>, window_params = [{transform_indices = @transform_0, window_bounds = array<i64: 160, 4>}, {pipeline_mode = #tpu.pipeline_mode<synchronous>, transform_indices = @transform_1, window_bounds = array<i64: 4, 128>}, {pipeline_mode = #tpu.pipeline_mode<synchronous>, transform_indices = @transform_2, window_bounds = array<i64: 1, 128>}, {pipeline_mode = #tpu.pipeline_mode<synchronous>, transform_indices = @transform_3, window_bounds = array<i64: 9, 128>}, {pipeline_mode = #tpu.pipeline_mode<synchronous>, transform_indices = @transform_4, window_bounds = array<i64: 1, 128>}, {pipeline_mode = #tpu.pipeline_mode<synchronous>, transform_indices = @transform_5, window_bounds = array<i64: 128, 4>}, {pipeline_mode = #tpu.pipeline_mode<synchronous>, transform_indices = @transform_6, window_bounds = array<i64: 1, 4>}, {transform_indices = @transform_7, window_bounds = array<i64: 128, 4>}]} {
    %c0 = arith.constant 0 : index
    %c0_0 = arith.constant 0 : index
    %0 = vector.load %arg2[%c0, %c0_0] : memref<160x4xbf16, #tpu.memory_space<vmem>>, vector<160x4xbf16>
    %c0_1 = arith.constant 0 : index
    %c0_2 = arith.constant 0 : index
    %1 = vector.load %arg3[%c0_1, %c0_2] : memref<4x128xbf16, #tpu.memory_space<vmem>>, vector<4x128xbf16>
    %cst = arith.constant dense<0.000000e+00> : vector<160x128xf32>
    %2 = tpu.matmul %0, %1, %cst {dimension_numbers = #tpu.dot_dimension_numbers<[1], [0], [0], [1], [0, 0, 1, 1], [], []>} : vector<160x4xbf16>, vector<4x128xbf16>, vector<160x128xf32> -> vector<160x128xf32>
    %c0_3 = arith.constant 0 : index
    %c0_4 = arith.constant 0 : index
    %3 = vector.load %arg4[%c0_3, %c0_4] : memref<1x128xf32, #tpu.memory_space<vmem>>, vector<1x128xf32>
    %4 = vector.broadcast %3 : vector<1x128xf32> to vector<160x128xf32>
    %5 = arith.addf %2, %4 : vector<160x128xf32>
    %cst_5 = arith.constant 0.000000e+00 : f32
    %6 = vector.broadcast %cst_5 : f32 to vector<160x128xf32>
    %7 = arith.maximumf %5, %6 : vector<160x128xf32>
    %8 = tpu.iota {dimensions = array<i32: 0>} : vector<160x1xi32>
    %c16_i32 = arith.constant 16 : i32
    %c0_i32 = arith.constant 0 : i32
    %9 = arith.cmpi eq, %c16_i32, %c0_i32 : i32
    %c1_i32 = arith.constant 1 : i32
    %10 = arith.select %9, %c1_i32, %c16_i32 : i32
    %11 = vector.broadcast %10 : i32 to vector<160x1xi32>
    %12 = arith.remsi %8, %11 : vector<160x1xi32>
    %c0_i32_6 = arith.constant 0 : i32
    %13 = vector.broadcast %c0_i32_6 : i32 to vector<160x1xi32>
    %14 = arith.cmpi ne, %12, %13 : vector<160x1xi32>
    %c0_i32_7 = arith.constant 0 : i32
    %15 = vector.broadcast %c0_i32_7 : i32 to vector<160x1xi32>
    %16 = arith.cmpi slt, %12, %15 : vector<160x1xi32>
    %c0_i32_8 = arith.constant 0 : i32
    %17 = arith.cmpi slt, %10, %c0_i32_8 : i32
    %18 = vector.broadcast %17 : i1 to vector<160x1xi1>
    %19 = vector.broadcast %18 : vector<160x1xi1> to vector<160x1xi1>
    %20 = arith.xori %16, %19 : vector<160x1xi1>
    %21 = arith.andi %20, %14 : vector<160x1xi1>
    %22 = vector.broadcast %10 : i32 to vector<160x1xi32>
    %23 = arith.addi %12, %22 : vector<160x1xi32>
    %24 = arith.select %21, %23, %12 : vector<160x1xi1>, vector<160x1xi32>
    %c1_i32_9 = arith.constant 1 : i32
    %25 = vector.broadcast %c1_i32_9 : i32 to vector<160x1xi32>
    %26 = arith.cmpi sge, %24, %25 : vector<160x1xi32>
    %c14_i32 = arith.constant 14 : i32
    %27 = vector.broadcast %c14_i32 : i32 to vector<160x1xi32>
    %28 = arith.cmpi sle, %24, %27 : vector<160x1xi32>
    %c1_i32_10 = arith.constant 1 : i32
    %29 = tpu.dynamic_rotate %7 by %c1_i32_10 dim 0 : vector<160x128xf32>, i32 -> vector<160x128xf32>
    %cst_11 = arith.constant 0.000000e+00 : f32
    %30 = vector.shape_cast %26 : vector<160x1xi1> to vector<160x1xi1>
    %31 = vector.broadcast %30 : vector<160x1xi1> to vector<160x128xi1>
    %32 = vector.broadcast %cst_11 : f32 to vector<160x128xf32>
    %33 = arith.select %31, %29, %32 : vector<160x128xi1>, vector<160x128xf32>
    %c159_i32 = arith.constant 159 : i32
    %34 = tpu.dynamic_rotate %7 by %c159_i32 dim 0 : vector<160x128xf32>, i32 -> vector<160x128xf32>
    %cst_12 = arith.constant 0.000000e+00 : f32
    %35 = vector.shape_cast %28 : vector<160x1xi1> to vector<160x1xi1>
    %36 = vector.broadcast %35 : vector<160x1xi1> to vector<160x128xi1>
    %37 = vector.broadcast %cst_12 : f32 to vector<160x128xf32>
    %38 = arith.select %36, %34, %37 : vector<160x128xi1>, vector<160x128xf32>
    %c0_13 = arith.constant 0 : index
    %c0_14 = arith.constant 0 : index
    %39 = vector.load %arg5[%c0_13, %c0_14] : memref<9x128xf32, #tpu.memory_space<vmem>>, vector<9x128xf32>
    %40 = vector.extract_strided_slice %39 {offsets = [0, 0], sizes = [1, 128], strides = [1, 1]} : vector<9x128xf32> to vector<1x128xf32>
    %41 = vector.broadcast %40 : vector<1x128xf32> to vector<160x128xf32>
    %42 = arith.mulf %41, %33 : vector<160x128xf32>
    %43 = vector.extract_strided_slice %39 {offsets = [1, 0], sizes = [1, 128], strides = [1, 1]} : vector<9x128xf32> to vector<1x128xf32>
    %44 = vector.broadcast %43 : vector<1x128xf32> to vector<160x128xf32>
    %45 = arith.mulf %44, %7 : vector<160x128xf32>
    %46 = arith.addf %42, %45 : vector<160x128xf32>
    %47 = vector.extract_strided_slice %39 {offsets = [2, 0], sizes = [1, 128], strides = [1, 1]} : vector<9x128xf32> to vector<1x128xf32>
    %48 = vector.broadcast %47 : vector<1x128xf32> to vector<160x128xf32>
    %49 = arith.mulf %48, %38 : vector<160x128xf32>
    %50 = arith.addf %46, %49 : vector<160x128xf32>
    %51 = vector.extract_strided_slice %39 {offsets = [3, 0], sizes = [1, 128], strides = [1, 1]} : vector<9x128xf32> to vector<1x128xf32>
    %52 = vector.broadcast %51 : vector<1x128xf32> to vector<160x128xf32>
    %53 = arith.mulf %52, %33 : vector<160x128xf32>
    %54 = vector.extract_strided_slice %39 {offsets = [4, 0], sizes = [1, 128], strides = [1, 1]} : vector<9x128xf32> to vector<1x128xf32>
    %55 = vector.broadcast %54 : vector<1x128xf32> to vector<160x128xf32>
    %56 = arith.mulf %55, %7 : vector<160x128xf32>
    %57 = arith.addf %53, %56 : vector<160x128xf32>
    %58 = vector.extract_strided_slice %39 {offsets = [5, 0], sizes = [1, 128], strides = [1, 1]} : vector<9x128xf32> to vector<1x128xf32>
    %59 = vector.broadcast %58 : vector<1x128xf32> to vector<160x128xf32>
    %60 = arith.mulf %59, %38 : vector<160x128xf32>
    %61 = arith.addf %57, %60 : vector<160x128xf32>
    %62 = vector.extract_strided_slice %39 {offsets = [6, 0], sizes = [1, 128], strides = [1, 1]} : vector<9x128xf32> to vector<1x128xf32>
    %63 = vector.broadcast %62 : vector<1x128xf32> to vector<160x128xf32>
    %64 = arith.mulf %63, %33 : vector<160x128xf32>
    %65 = vector.extract_strided_slice %39 {offsets = [7, 0], sizes = [1, 128], strides = [1, 1]} : vector<9x128xf32> to vector<1x128xf32>
    %66 = vector.broadcast %65 : vector<1x128xf32> to vector<160x128xf32>
    %67 = arith.mulf %66, %7 : vector<160x128xf32>
    %68 = arith.addf %64, %67 : vector<160x128xf32>
    %69 = vector.extract_strided_slice %39 {offsets = [8, 0], sizes = [1, 128], strides = [1, 1]} : vector<9x128xf32> to vector<1x128xf32>
    %70 = vector.broadcast %69 : vector<1x128xf32> to vector<160x128xf32>
    %71 = arith.mulf %70, %38 : vector<160x128xf32>
    %72 = arith.addf %68, %71 : vector<160x128xf32>
    %cst_15 = arith.constant 0.000000e+00 : f32
    %73 = vector.broadcast %cst_15 : f32 to vector<16x128xf32>
    %74 = vector.extract_strided_slice %50 {offsets = [0, 0], sizes = [144, 128], strides = [1, 1]} : vector<160x128xf32> to vector<144x128xf32>
    %75 = tpu.concatenate %73, %74 in 0 : vector<16x128xf32>, vector<144x128xf32> -> vector<160x128xf32>
    %76 = arith.addf %61, %75 : vector<160x128xf32>
    %77 = vector.extract_strided_slice %72 {offsets = [16, 0], sizes = [144, 128], strides = [1, 1]} : vector<160x128xf32> to vector<144x128xf32>
    %78 = tpu.concatenate %77, %73 in 0 : vector<144x128xf32>, vector<16x128xf32> -> vector<160x128xf32>
    %79 = arith.addf %76, %78 : vector<160x128xf32>
    %80 = vector.extract_strided_slice %79 {offsets = [16, 0], sizes = [128, 128], strides = [1, 1]} : vector<160x128xf32> to vector<128x128xf32>
    %c0_16 = arith.constant 0 : index
    %c0_17 = arith.constant 0 : index
    %81 = vector.load %arg6[%c0_16, %c0_17] : memref<1x128xf32, #tpu.memory_space<vmem>>, vector<1x128xf32>
    %82 = vector.broadcast %81 : vector<1x128xf32> to vector<128x128xf32>
    %83 = arith.addf %80, %82 : vector<128x128xf32>
    %cst_18 = arith.constant 0.000000e+00 : f32
    %84 = vector.broadcast %cst_18 : f32 to vector<128x128xf32>
    %85 = arith.maximumf %83, %84 : vector<128x128xf32>
    %86 = arith.truncf %85 : vector<128x128xf32> to vector<128x128xbf16>
    %c0_19 = arith.constant 0 : index
    %c0_20 = arith.constant 0 : index
    %87 = vector.load %arg7[%c0_19, %c0_20] : memref<128x4xbf16, #tpu.memory_space<vmem>>, vector<128x4xbf16>
    %cst_21 = arith.constant dense<0.000000e+00> : vector<128x4xf32>
    %88 = tpu.matmul %86, %87, %cst_21 {dimension_numbers = #tpu.dot_dimension_numbers<[1], [0], [0], [1], [0, 0, 1, 1], [], []>} : vector<128x128xbf16>, vector<128x4xbf16>, vector<128x4xf32> -> vector<128x4xf32>
    %c0_22 = arith.constant 0 : index
    %c0_23 = arith.constant 0 : index
    %89 = vector.load %arg8[%c0_22, %c0_23] : memref<1x4xf32, #tpu.memory_space<vmem>>, vector<1x4xf32>
    %90 = vector.broadcast %89 : vector<1x4xf32> to vector<128x4xf32>
    %91 = arith.addf %88, %90 : vector<128x4xf32>
    %92 = vector.extract_strided_slice %0 {offsets = [16, 0], sizes = [128, 4], strides = [1, 1]} : vector<160x4xbf16> to vector<128x4xbf16>
    %93 = arith.extf %92 : vector<128x4xbf16> to vector<128x4xf32>
    %94 = arith.addf %91, %93 : vector<128x4xf32>
    %c0_24 = arith.constant 0 : index
    %c0_25 = arith.constant 0 : index
    %95 = vector.load %arg9[%c0_24, %c0_25] : memref<128x4xf32, #tpu.memory_space<vmem>>, vector<128x4xf32>
    tpu.vector_store %arg9[%c0_24, %c0_25], %94 {strides = array<i32>} : memref<128x4xf32, #tpu.memory_space<vmem>>, vector<128x4xf32>,
    return
  }
  func.func @transform_0(%arg0: i32, %arg1: i32) -> (i32, i32) {
    %c2_i32 = arith.constant 2 : i32
    %0 = arith.muli %arg0, %c2_i32 : i32
    %1 = arith.addi %0, %arg1 : i32
    %c0_i32 = arith.constant 0 : i32
    %c0_i32_0 = arith.constant 0 : i32
    return %1, %c0_i32 : i32, i32
  }
  func.func @transform_1(%arg0: i32, %arg1: i32) -> (i32, i32) {
    %c0_i32 = arith.constant 0 : i32
    %c0_i32_0 = arith.constant 0 : i32
    %c0_i32_1 = arith.constant 0 : i32
    return %c0_i32, %c0_i32_0 : i32, i32
  }
  func.func @transform_2(%arg0: i32, %arg1: i32) -> (i32, i32) {
    %c0_i32 = arith.constant 0 : i32
    %c0_i32_0 = arith.constant 0 : i32
    %c0_i32_1 = arith.constant 0 : i32
    return %c0_i32, %c0_i32_0 : i32, i32
  }
  func.func @transform_3(%arg0: i32, %arg1: i32) -> (i32, i32) {
    %c0_i32 = arith.constant 0 : i32
    %c0_i32_0 = arith.constant 0 : i32
    %c0_i32_1 = arith.constant 0 : i32
    return %c0_i32, %c0_i32_0 : i32, i32
  }
  func.func @transform_4(%arg0: i32, %arg1: i32) -> (i32, i32) {
    %c0_i32 = arith.constant 0 : i32
    %c0_i32_0 = arith.constant 0 : i32
    %c0_i32_1 = arith.constant 0 : i32
    return %c0_i32, %c0_i32_0 : i32, i32
  }
  func.func @transform_5(%arg0: i32, %arg1: i32) -> (i32, i32) {
    %c0_i32 = arith.constant 0 : i32
    %c0_i32_0 = arith.constant 0 : i32
    %c0_i32_1 = arith.constant 0 : i32
    return %c0_i32, %c0_i32_0 : i32, i32
  }
  func.func @transform_6(%arg0: i32, %arg1: i32) -> (i32, i32) {
    %c0_i32 = arith.constant 0 : i32
    %c0_i32_0 = arith.constant 0 : i32
    %c0_i32_1 = arith.constant 0 : i32
    return %c0_i32, %c0_i32_0 : i32, i32
  }
  func.func @transform_7(%arg0: i32, %arg1: i32) -> (i32, i32) {
    %c2_i32 = arith.constant 2 : i32
    %0 = arith.muli %arg0, %c2_i32 : i32
    %1 = arith.addi %0, %arg1 : i32
    %c0_i32 = arith.constant 0 : i32
    %c0_i32_0 = arith.constant 0 : i32
    return %1, %c0_i32 : i32, i32
  }
}

</mosaic_0001>

<bundles_post_ra>
// kernel: tpu_custom_call.1
= control target key start
LH: loop header
LB: loop body
LE: loop exit
PB: predicated region body
PF: predicated region fallthrough
CT: control target
= control target key end

     0   :  { %s2015_s24 = smov 0   ;;  %s2017_s25 = smov 0   ;;  %s3218_s0 = inlined_call_operand.vmem [shape: bf16[640,4], index: 0, kind: input, shape index: {}]   ;;  %s3219_s1 = inlined_call_operand.vmem [shape: bf16[4,128], index: 1, kind: input, shape index: {}]   ;;  %s3220_s2 = inlined_call_operand.vmem [shape: f32[1,128], index: 2, kind: input, shape index: {}]   ;;  %s3221_s3 = inlined_call_operand.vmem [shape: f32[9,128], index: 3, kind: input, shape index: {}]   ;;  %s3222_s4 = inlined_call_operand.vmem [shape: f32[1,128], index: 4, kind: input, shape index: {}]   ;;  %s3223_s5 = inlined_call_operand.vmem [shape: bf16[128,4], index: 5, kind: input, shape index: {}]   ;;  %s3224_s6 = inlined_call_operand.vmem [shape: f32[1,4], index: 6, kind: input, shape index: {}]   ;;  %s3225_s7 = inlined_call_operand.vmem [shape: f32[512,4], index: 7, kind: output, shape index: {}]  }
   0x1   :  { %s2019_s26 = smov 0   ;;  %s2021_s27 = smov 0  }
   0x2   :  { %s2023_s28 = smov 0  }
   0x3 LB: > { %s26_s29 = sadd.s32 1, %s1965_s26  ;;  %s29_s30 = sadd.s32 1, %s1969_s27  ;;  %s1973_s28 = sphi %s2023_s28, %s17_s28   ;;  %s1969_s27 = sphi %s2021_s27, %s3450_s27   ;;  %s1965_s26 = sphi %s2019_s26, %s3449_s26   ;;  %s1961_s25 = sphi %s2017_s25, %s3448_s25   ;;  %s1957_s24 = sphi %s2015_s24, %s3447_s24  }
   0x4   : > { %p27_p0 = scmp.ge.s32.totalorder %s26_s29, 2  ;;  %p1723_p1 = scmp.ge.s32.totalorder %s1973_s28, 1 }
   0x5   : > { %p262_p2 = scmp.lt.s32.totalorder %s1973_s28, 5 }
   0x6   : > { %s3452_s29 = smov (%p27_p0, %s26_s29), 0  ;;  %s3454_s30 = smov (!%p27_p0, %s29_s30), %s1969_s27 }
   0x7   : > { %p263_p3 = pnand %p1723_p1, %p262_p2  ;;  %p31_p4 = scmp.ge.s32.totalorder %s3454_s30, 2 }
   0x9   : > { %s3456_s30 = smov (%p31_p4, %s3454_s30), 0  ;;  %266 = sbr.rel (%p263_p3) target bundleno = 598 (0x256), region = 48 }
  0x10   : > { %v339_v0 = vld [vmem:[%s3219_s1] sm:$0x3]  ;;  %vm428_vm0 = vcmask 1041408   ;;  %s1724_s10 = sshll.u32 %s1961_s25, 1  ;;  %vm397_vm1 = vcmask 31744   ;;  %v1912_v13 = vld [vmem:[%s3223_s5 + $0x8] sm:$0xff]   ;;  %v565_v20 = vlaneseq }
  0x11   : > { %1860 = vmatprep.subr.msk.bf16.mxu0 %vm428_vm0, %v339_v0  ;;  %v430_v1 = vsel %vm428_vm0, %v339_v0, 0  ;;  %s2048_s11 = sadd.s32 %s1957_s24, %s1724_s10  ;;  %v1911_v12 = vld [vmem:[%s3223_s5] sm:$0xff]   ;;  %v1913_v14 = vld [vmem:[%s3223_s5 + $0x10] sm:$0xff]   ;;  %v1914_v15 = vld [vmem:[%s3223_s5 + $0x18] sm:$0xff]  }
  0x12   : > { %1791 = vmatpush3.bf16.msra.mxu0 %v430_v1  ;;  %s300_s12 = smul.u32 20, %s2048_s11  ;;  %1844 = vmatprep.subr.bf16.mxu1 %v1911_v12  ;;  %v1915_v16 = vld [vmem:[%s3223_s5 + $0x20] sm:$0xff]   ;;  %v1916_v17 = vld [vmem:[%s3223_s5 + $0x28] sm:$0xff]   ;;  %v1917_v18 = vld [vmem:[%s3223_s5 + $0x30] sm:$0xff]   ;;  %v2100_v21 = vshrl.u32 %v565_v20, 7  ;;  %s1727_s25 = sshll.u32 %s2048_s11, 4 }
  0x13   : > { %1812 = vmatprep.subr.bf16.mxu0 %v1911_v12  ;;  %1852 = vmatpush3.bf16.msra.mxu1 %v1911_v12  ;;  %v1918_v19 = vld [vmem:[%s3223_s5 + $0x38] sm:$0xff]   ;;  %v1068_v23 = vld [vmem:[%s3221_s3] sm:$0xff]  ;;  %p311_p6 = scmp.lt.s32.totalorder %s1727_s25, 63 }
  0x14   : > { %p301_p5 = scmp.lt.s32.totalorder %s300_s12, 79  ;;  %1845 = vmatprep.subr.bf16.mxu1 %v1912_v13  ;;  %v1092_v22 = vsub.s32 1, %v2100_v21  ;;  %v1184_v24 = vsub.s32 4, %v2100_v21  ;;  %v1072_v25 = vsub.s32 0, %v2100_v21  ;;  %v1128_v26 = vsub.s32 2, %v2100_v21 }
  0x15   : > { %v1164_v28 = vsub.s32 3, %v2100_v21  ;;  %v567_v29 = vadd.s32 8, %v2100_v21  ;;  %v568_v30 = vadd.s32 16, %v2100_v21  ;;  %v1276_v31 = vsub.s32 7, %v2100_v21  ;;  %v2157_v51 = vld [vmem:[%s3220_s2] ss:$0 sm:$0xff] }
  0x16   : > { %s3458_s12 = smov (!%p301_p5, %s300_s12), 79  ;;  %v2109_v27 = vrot.slane %v1068_v23, %v1092_v22  ;;  %v1256_v32 = vsub.s32 6, %v2100_v21  ;;  %v2117_v33 = vadd.s32 32, %v2100_v21  ;;  %v2120_v34 = vadd.s32 40, %v2100_v21  ;;  %s3460_s25 = smov (!%p311_p6, %s1727_s25), 63 }
  0x17   : > { %s1725_s13 = sshll.u32 %s3458_s12, 2  ;;  %1853 = vmatpush3.bf16.msra.mxu1 %v1912_v13  ;;  %v2122_v35 = vrot.slane %v1068_v23, %v1184_v24  ;;  %v2125_v36 = vadd.s32 48, %v2100_v21  ;;  %v2128_v37 = vadd.s32 56, %v2100_v21  ;;  %v2131_v38 = vadd.s32 64, %v2100_v21  ;;  %s1728_s10 = sshll.u32 %s3460_s25, 3 }
  0x18   : > { %s2054_s16 = scalar_lea.vmem %s3218_s0, %s1725_s13  ;;  %1846 = vmatprep.subr.bf16.mxu1 %v1913_v14  ;;  %v2133_v39 = vrot.slane %v1068_v23, %v1072_v25  ;;  %v2135_v40 = vrot.slane %v1068_v23, %v1128_v26  ;;  %v2138_v41 = vadd.s32 120, %v2100_v21  ;;  %v2141_v42 = vadd.s32 72, %v2100_v21  ;;  %s3148_s11 = scalar_lea.vmem %s3225_s7, %s1728_s10 }
  0x19   : > { %v1901_v2 = vld [vmem:[%s2054_s16] sm:$0xff]   ;;  %v321_v3 = vld [vmem:[%s2054_s16 + $0x8] sm:$0xff]   ;;  %v323_v4 = vld [vmem:[%s2054_s16 + $0x10] sm:$0xff]   ;;  %v2143_v43 = vrot.slane %v1068_v23, %v1164_v28  ;;  %v597_v44 = vand.u32 15, %v567_v29  ;;  %v604_v45 = vand.u32 15, %v568_v30  ;;  %v2146_v46 = vadd.s32 128, %v2100_v21 }
  0x1a   : > { %1792 = vmatprep.mubr.msk.bf16.mxu0 %vm397_vm1, %v1901_v2  ;;  %v325_v5 = vld [vmem:[%s2054_s16 + $0x18] sm:$0xff]   ;;  %v327_v6 = vld [vmem:[%s2054_s16 + $0x20] sm:$0xff]   ;;  %v329_v7 = vld [vmem:[%s2054_s16 + $0x28] sm:$0xff]   ;;  %v2148_v47 = vrot.slane %v1068_v23, %v1276_v31  ;;  %v2150_v48 = vrot.slane %v1068_v23, %v1256_v32  ;;  %v618_v49 = vand.u32 15, %v2117_v33  ;;  %v2160_v52 = vadd.s32 152, %v2100_v21 }
  0x1b   : > { %1793 = vmatmul.mubr.msk.bf16.vlgmr.msra.gmra.mrb[0].mxu0 %vm397_vm1, %v321_v3  ;;  %v331_v8 = vld [vmem:[%s2054_s16 + $0x30] sm:$0xff]   ;;  %v333_v9 = vld [vmem:[%s2054_s16 + $0x38] sm:$0xff]   ;;  %v335_v10 = vld [vmem:[%s2054_s16 + $0x40] sm:$0xff]   ;;  %1854 = vmatpush3.bf16.msra.mxu1 %v1913_v14  ;;  %v632_v53 = vand.u32 15, %v2125_v36  ;;  %v646_v55 = vand.u32 15, %v2131_v38  ;;  %vm886_vm2 = vcmp.lt.s32.totalorder %v2100_v21, 1 }
  0x1c   : > { %1796 = vmatprep.mubr.msk.bf16.mxu0 %vm397_vm1, %v323_v4  ;;  %v1910_v11 = vld [vmem:[%s2054_s16 + $0x48] sm:$0xff]   ;;  %1813 = vmatpush3.bf16.msra.mxu0 %v1911_v12  ;;  %vm987_vm3 = vcmp.lt.s32.totalorder %v2100_v21, 7  ;;  %v2169_v57 = vadd.s32 144, %v2100_v21  ;;  %v1220_v59 = vsub.s32 5, %v2100_v21  ;;  %v2175_v62 = vadd.s32 80, %v2100_v21 }
  0x1d   : > { %1814 = vmatprep.subr.bf16.mxu0 %v1912_v13  ;;  %1847 = vmatprep.subr.bf16.mxu1 %v1914_v15  ;;  %v2178_v63 = vadd.s32 88, %v2100_v21  ;;  %v2181_v0 = vadd.s32 24, %v2100_v21  ;;  %vm2184_vm4 = vcmp.ge.s32.totalorder %v604_v45, 1  ;;  %v2189_v4 = vadd.s32 96, %v2100_v21 }
  0x1e   : > { %vm2198_vm5 = vcmp.le.s32.totalorder %v597_v44, 14  ;;  %v2205_v12 = vadd.s32 136, %v2100_v21  ;;  %vm2319_vm6 = vcmp.ge.s32.totalorder %v618_v49, 1  ;;  %vm2335_vm7 = vcmp.ge.s32.totalorder %v632_v53, 1 }
  0x1f   : > { %1855 = vmatpush3.bf16.msra.mxu1 %v1914_v15  ;;  %3249 = vst [vmem:[#allocation2_spill] sm:$0xff] %v2181_v0  ;;  %vm2351_vm8 = vcmp.ge.s32.totalorder %v646_v55, 1 }
  0x20   : > { %1815 = vmatpush3.bf16.msra.mxu0 %v1912_v13  ;;  %1848 = vmatprep.subr.bf16.mxu1 %v1915_v16  ;;  %3255 = vst [vmem:[#allocation4_spill] sm:$0xff] %v2205_v12 }
  0x21   : > { %1816 = vmatprep.subr.bf16.mxu0 %v1913_v14 }
  0x23   : > { %1797 = vmatmul.mubr.msk.bf16.gmra.mrb[4].mxu0 %vm397_vm1, %v325_v5  ;;  %1856 = vmatpush3.bf16.msra.mxu1 %v1915_v16  ;;  %v2192_v5 = vadd.s32 104, %v2100_v21 }
  0x24   : > { %1800 = vmatprep.mubr.msk.bf16.mxu0 %vm397_vm1, %v327_v6  ;;  %1817 = vmatpush3.bf16.msra.mxu0 %v1913_v14  ;;  %v2195_v6 = vadd.s32 112, %v2100_v21 }
  0x25   : > { %1818 = vmatprep.subr.bf16.mxu0 %v1914_v15  ;;  %1849 = vmatprep.subr.bf16.mxu1 %v1916_v17 }
  0x26   : > { %3252 = vst [vmem:[#allocation3_spill] sm:$0xff] %v2195_v6 }
  0x27   : > { %1857 = vmatpush3.bf16.msra.mxu1 %v1916_v17 }
  0x28   : > { %1819 = vmatpush3.bf16.msra.mxu0 %v1914_v15  ;;  %1850 = vmatprep.subr.bf16.mxu1 %v1917_v18 }
  0x29   : > { %1820 = vmatprep.subr.bf16.mxu0 %v1915_v16 }
  0x2b   : > { %1801 = vmatmul.mubr.msk.bf16.gmra.mrb[8].mxu0 %vm397_vm1, %v329_v7  ;;  %1858 = vmatpush3.bf16.msra.mxu1 %v1917_v18 }
  0x2c   : > { %1804 = vmatprep.mubr.msk.bf16.mxu0 %vm397_vm1, %v331_v8  ;;  %1821 = vmatpush3.bf16.msra.mxu0 %v1915_v16 }
  0x2d   : > { %1822 = vmatprep.subr.bf16.mxu0 %v1916_v17  ;;  %1851 = vmatprep.subr.bf16.mxu1 %v1918_v19 }
  0x2f   : > { %1859 = vmatpush3.bf16.msra.mxu1 %v1918_v19 }
  0x30   : > { %1823 = vmatpush3.bf16.msra.mxu0 %v1916_v17  ;;  %v2209_v17 = vrot.slane %v1068_v23, %v1220_v59 }
  0x31   : > { %1824 = vmatprep.subr.bf16.mxu0 %v1917_v18 }
  0x33   : > { %1805 = vmatmul.mubr.msk.bf16.gmra.mrb[12].mxu0 %vm397_vm1, %v333_v9 }
  0x34   : > { %1808 = vmatprep.mubr.msk.bf16.mxu0 %vm397_vm1, %v335_v10  ;;  %1825 = vmatpush3.bf16.msra.mxu0 %v1917_v18 }
  0x35   : > { %1826 = vmatprep.subr.bf16.mxu0 %v1918_v19 }
  0x38   : > { %1827 = vmatpush3.bf16.msra.mxu0 %v1918_v19 }
  0x3b   : > { %1809 = vmatmul.mubr.msk.bf16.gmra.mrb[16].mxu0 %vm397_vm1, %v1910_v11 }
  0xee   : > { %v1794_v60 = vpop.f32.mrb[0].mxu0 }
  0xef   : > { %v475_v1 = vadd.f32 %v1794_v60, %v2157_v51  ;;  %v466_v2 = vpop.f32.mrb[1].mxu0 }
  0xf0   : > { %v467_v7 = vadd.f32 %v2157_v51, %v466_v2  ;;  %v1795_v8 = vpop.f32.mrb[2].mxu0 }
  0xf1   : > { %v547_v13 = vmax.f32 %v475_v1, 0.0  ;;  %v478_v14 = vadd.f32 %v1795_v8, %v2157_v51  ;;  %v469_v15 = vpop.f32.mrb[3].mxu0 }
  0xf2   : > { %v2211_v18 = vmax.f32 %v467_v7, 0.0  ;;  %v470_v19 = vadd.f32 %v2157_v51, %v469_v15 }
  0xf3   : > { %v868_v29 = vrot.slane %v547_v13, 7  ;;  %v969_v30 = vrot.slane %v547_v13, 1  ;;  %v2220_v23 = vmax.f32 %v478_v14, 0.0  ;;  %v1096_v32 = vmul.f32 %v2109_v27, %v547_v13 }
  0xf4   : > { %v1186_v44 = vmul.f32 %v2122_v35, %v547_v13  ;;  %v3227_v45 = vrot.slane %v2211_v18, 7  ;;  %v546_v59 = vmax.f32 %v470_v19, 0.0  ;;  %v3228_v60 = vrot.slane %v2211_v18, 1 }
  0xf5   : > { %3256 = vst [vmem:[#allocation5_spill] sm:$0xff] %v2220_v23  ;;  %v2229_v1 = vmul.f32 %v2109_v27, %v2211_v18  ;;  %v3229_v2 = vrot.slane %v2220_v23, 7  ;;  %v3226_v7 = vrot.slane %v2220_v23, 1  ;;  %v1097_v14 = vmul.f32 %v2109_v27, %v2220_v23 }
  0xf6   : > { %v1798_v8 = vpop.f32.mrb[4].mxu0  ;;  %v1187_v13 = vmul.f32 %v2122_v35, %v2220_v23  ;;  %v867_v15 = vrot.slane %v546_v59, 7  ;;  %v968_v28 = vrot.slane %v546_v59, 1  ;;  %v1095_v25 = vmul.f32 %v2109_v27, %v546_v59 }
  0xf7   : > { %v482_v19 = vpop.f32.mrb[5].mxu0  ;;  %v903_v31 = vsel %vm886_vm2, %v868_v29, %v3229_v2  ;;  %v1004_v26 = vsel %vm987_vm3, %v969_v30, %v3226_v7  ;;  %v491_v24 = vadd.f32 %v1798_v8, %v2157_v51 }
  0xf8   : > { %v1799_v22 = vpop.f32.mrb[6].mxu0  ;;  %v1077_v20 = vmul.f32 %v2133_v39, %v903_v31  ;;  %v1167_v16 = vmul.f32 %v2143_v43, %v903_v31  ;;  %v904_v11 = vsel %vm886_vm2, %v867_v15, %v868_v29  ;;  %v483_v56 = vadd.f32 %v2157_v51, %v482_v19 }
  0xf9   : > { %v485_v10 = vpop.f32.mrb[7].mxu0  ;;  %v905_v7 = vsel %vm886_vm2, %v3227_v45, %v867_v15  ;;  %v949_v59 = vsel %vm2184_vm4, %v904_v11, 0.0  ;;  %v1005_v8 = vsel %vm987_vm3, %v968_v28, %v969_v30  ;;  %v1006_v31 = vsel %vm987_vm3, %v3228_v60, %v968_v28 }
  0xfa   : > { %v2264_v29 = vadd.f32 %v1097_v14, %v1077_v20  ;;  %v2266_v19 = vadd.f32 %v1187_v13, %v1167_v16  ;;  %v1049_v61 = vsel %vm2198_vm5, %v1005_v8, 0.0  ;;  %v1075_v15 = vmul.f32 %v2133_v39, %v905_v7 }
  0xfb   : > { %v1132_v3 = vmul.f32 %v2135_v40, %v1004_v26  ;;  %v1076_v11 = vmul.f32 %v2133_v39, %v949_v59  ;;  %v1131_v30 = vmul.f32 %v2135_v40, %v1049_v61  ;;  %v1166_v45 = vmul.f32 %v2143_v43, %v949_v59 }
  0xfc   : > { %3257 = vst [vmem:[#allocation6_spill] sm:$0xff] %v2264_v29  ;;  %3258 = vst [vmem:[#allocation7_spill] sm:$0xff] %v2266_v19  ;;  %v1111_v58 = vadd.f32 %v1095_v25, %v1075_v15  ;;  %v2275_v54 = vmax.f32 %v491_v24, 0.0  ;;  %v2277_v20 = vmax.f32 %v483_v56, 0.0  ;;  %v494_v16 = vadd.f32 %v1799_v22, %v2157_v51 }
  0xfd   : > { %v1112_v28 = vadd.f32 %v1096_v32, %v1076_v11  ;;  %v2281_v9 = vmul.f32 %v2135_v40, %v1006_v31  ;;  %v2283_v7 = vadd.f32 %v1186_v44, %v1166_v45  ;;  %v486_v14 = vadd.f32 %v2157_v51, %v485_v10 }
  0xfe   : > { %v1802_v13 = vpop.f32.mrb[8].mxu0  ;;  %v2286_v8 = vadd.f32 %v1131_v30, %v1111_v58  ;;  %v872_v61 = vrot.slane %v2275_v54, 7  ;;  %v2291_v56 = vmul.f32 %v2209_v17, %v1004_v26  ;;  %v2297_v32 = vmul.f32 %v2109_v27, %v2275_v54 }
  0xff   : > { %3259 = vst [vmem:[#allocation8_spill] sm:$0xff] %v2281_v9  ;;  %3260 = vst [vmem:[#allocation9_spill] sm:$0xff] %v2283_v7  ;;  %v498_v25 = vpop.f32.mrb[9].mxu0  ;;  %v2293_v22 = vadd.f32 %v1132_v3, %v1112_v28  ;;  %v2301_v10 = vmul.f32 %v2148_v47, %v2275_v54  ;;  %v870_v58 = vrot.slane %v2277_v20, 7  ;;  %v2307_v59 = vmul.f32 %v2122_v35, %v2277_v20 }
 0x100   : > { %3261 = vst [vmem:[#allocation10_spill] sm:$0xff] %v2286_v8  ;;  %3262 = vst [vmem:[#allocation11_spill] sm:$0xff] %v2291_v56  ;;  %v1803_v44 = vpop.f32.mrb[10].mxu0  ;;  %v2309_v26 = vmax.f32 %v494_v16, 0.0  ;;  %v2311_v31 = vmax.f32 %v486_v14, 0.0  ;;  %v507_v3 = vadd.f32 %v1802_v13, %v2157_v51  ;;  %v499_v11 = vadd.f32 %v2157_v51, %v498_v25 }
 0x101   : > { %3263 = vst [vmem:[#allocation12_spill] sm:$0xff] %v2293_v22  ;;  %3264 = vst [vmem:[#allocation13_spill] sm:$0xff] %v2297_v32  ;;  %v501_v15 = vpop.f32.mrb[11].mxu0  ;;  %v510_v30 = vadd.f32 %v1803_v44, %v2157_v51  ;;  %v2325_v16 = vmul.f32 %v2148_v47, %v2277_v20  ;;  %v3285_v9 = vand.u32 15, %v2120_v34  ;;  %v3304_v60 = vand.u32 15, %v2146_v46 }
 0x102   : > { %v502_v28 = vadd.f32 %v2157_v51, %v501_v15  ;;  %v873_v14 = vrot.slane %v2309_v26, 7  ;;  %v2331_v25 = vmul.f32 %v2109_v27, %v2309_v26  ;;  %v2341_v49 = vmul.f32 %v2148_v47, %v2309_v26 }
 0x103   : > { %3267 = vst [vmem:[#allocation14_spill] sm:$0xff] %v2325_v16  ;;  %v871_v44 = vrot.slane %v2311_v31, 7  ;;  %v2347_v45 = vmul.f32 %v2122_v35, %v2311_v31  ;;  %v2355_v53 = vmax.f32 %v507_v3, 0.0  ;;  %v2357_v24 = vmax.f32 %v499_v11, 0.0 }
 0x104   : > { %3268 = vst [vmem:[#allocation15_spill] sm:$0xff] %v2331_v25  ;;  %v2359_v13 = vmax.f32 %v510_v30, 0.0  ;;  %v2361_v50 = vmax.f32 %v502_v28, 0.0  ;;  %v2365_v15 = vsel %vm886_vm2, %v872_v61, %v873_v14  ;;  %v3274_v3 = vrot.slane %v2220_v23, 7 }
 0x105   : > { %3273 = vst [vmem:[#allocation16_spill] sm:$0xff] %v2355_v53  ;;  %v900_v38 = vsel %vm886_vm2, %v871_v44, %v872_v61  ;;  %v2371_v55 = vsel %vm886_vm2, %v870_v58, %v871_v44  ;;  %v2379_v30 = vmul.f32 %v2148_v47, %v2311_v31  ;;  %v2385_v61 = vmul.f32 %v2109_v27, %v2355_v53 }
 0x106   : > { %v1806_v2 = vpop.f32.mrb[12].mxu0  ;;  %v902_v11 = vsel %vm886_vm2, %v3274_v3, %v870_v58  ;;  %v2389_v44 = vmul.f32 %v2122_v35, %v2355_v53  ;;  %v2393_v58 = vmul.f32 %v2148_v47, %v2355_v53  ;;  %v874_v3 = vrot.slane %v2357_v24, 7 }
 0x107   : > { %3275 = vst [vmem:[#allocation17_spill] sm:$0xff] %v2379_v30  ;;  %3276 = vst [vmem:[#allocation18_spill] sm:$0xff] %v2385_v61  ;;  %v514_v8 = vpop.f32.mrb[13].mxu0  ;;  %v2399_v22 = vmul.f32 %v2109_v27, %v2357_v24  ;;  %v2403_v16 = vmul.f32 %v2122_v35, %v2357_v24  ;;  %v2409_v7 = vmul.f32 %v2109_v27, %v2359_v13  ;;  %v976_v23 = vrot.slane %v2361_v50, 1 }
 0x108   : > { %3277 = vst [vmem:[#allocation19_spill] sm:$0xff] %v2389_v44  ;;  %3278 = vst [vmem:[#allocation20_spill] sm:$0xff] %v2393_v58  ;;  %v1807_v28 = vpop.f32.mrb[14].mxu0  ;;  %v2413_v30 = vmul.f32 %v2122_v35, %v2359_v13  ;;  %v2419_v0 = vmul.f32 %v2148_v47, %v2359_v13  ;;  %v2423_v29 = vmul.f32 %v2109_v27, %v2361_v50  ;;  %vm2431_vm9 = vcmp.le.s32.totalorder %v3285_v9, 14 }
 0x109   : > { %3279 = vst [vmem:[#allocation21_spill] sm:$0xff] %v2399_v22  ;;  %3280 = vst [vmem:[#allocation22_spill] sm:$0xff] %v2403_v16  ;;  %v517_v56 = vpop.f32.mrb[15].mxu0  ;;  %v523_v19 = vadd.f32 %v1806_v2, %v2157_v51  ;;  %v526_v61 = vadd.f32 %v1807_v28, %v2157_v51  ;;  %v3288_v44 = vand.u32 15, %v2128_v37  ;;  %v3291_v2 = vrot.slane %v2361_v50, 7 }
 0x10a   : > { %3281 = vst [vmem:[#allocation23_spill] sm:$0xff] %v2409_v7  ;;  %3282 = vst [vmem:[#allocation24_spill] sm:$0xff] %v2413_v30  ;;  %v515_v7 = vadd.f32 %v2157_v51, %v514_v8  ;;  %v518_v12 = vadd.f32 %v2157_v51, %v517_v56  ;;  %v898_v56 = vsel %vm886_vm2, %v873_v14, %v874_v3  ;;  %v3295_v28 = vand.u32 15, %v2141_v42 }
 0x10b   : > { %3283 = vst [vmem:[#allocation25_spill] sm:$0xff] %v2419_v0  ;;  %3284 = vst [vmem:[#allocation26_spill] sm:$0xff] %v2423_v29  ;;  %vm2437_vm10 = vcmp.le.s32.totalorder %v3288_v44, 14  ;;  %v2445_v8 = vsel %vm886_vm2, %v874_v3, %v3291_v2  ;;  %v2451_v34 = vmul.f32 %v2122_v35, %v2361_v50  ;;  %v2453_v9 = vmax.f32 %v523_v19, 0.0 }
 0x10c   : > { %v2455_v37 = vmax.f32 %v515_v7, 0.0  ;;  %vm2459_vm11 = vcmp.le.s32.totalorder %v3295_v28, 14  ;;  %v2465_v2 = vsel %vm2319_vm6, %v902_v11, 0.0  ;;  %v2467_v29 = vmax.f32 %v526_v61, 0.0 }
 0x10d   : > { %3292 = vst [vmem:[#allocation27_spill] sm:$0xff] %v2451_v34  ;;  %3293 = vst [vmem:[#allocation28_spill] sm:$0xff] %v2453_v9  ;;  %v2469_v14 = vmax.f32 %v518_v12, 0.0  ;;  %v2473_v19 = vsel %vm2335_vm7, %v900_v38, 0.0  ;;  %v3300_v7 = vrot.slane %v2355_v53, 1  ;;  %v2483_v11 = vmul.f32 %v2109_v27, %v2453_v9 }
 0x10e   : > { %3294 = vst [vmem:[#allocation29_spill] sm:$0xff] %v2455_v37  ;;  %3298 = vst [vmem:[#allocation30_spill] sm:$0xff] %v2467_v29  ;;  %v1810_v3 = vpop.f32.mrb[16].mxu0  ;;  %v2487_v61 = vsel %vm2351_vm8, %v898_v56, 0.0  ;;  %v2491_v33 = vmul.f32 %v2122_v35, %v2453_v9  ;;  %v2495_v38 = vmul.f32 %v2148_v47, %v2453_v9  ;;  %vm2501_vm12 = vcmp.ge.s32.totalorder %v3304_v60, 1 }
 0x10f   : > { %3299 = vst [vmem:[#allocation31_spill] sm:$0xff] %v2469_v14  ;;  %v997_v42 = vsel %vm987_vm3, %v976_v23, %v3300_v7  ;;  %3301 = vst [vmem:[#allocation32_spill] sm:$0xff] %v2483_v11  ;;  %v530_v12 = vpop.f32.mrb[17].mxu0  ;;  %v2507_v56 = vmul.f32 %v2109_v27, %v2455_v37  ;;  %v2515_v7 = vmul.f32 %v2148_v47, %v2455_v37  ;;  %v3310_v46 = vand.u32 15, %v2100_v21  ;;  %v3429_v21 = vld [vmem:[#allocation9_spill] sm:$0xff] }
 0x110   : > { %3302 = vst [vmem:[#allocation33_spill] sm:$0xff] %v2491_v33  ;;  %3303 = vst [vmem:[#allocation34_spill] sm:$0xff] %v2495_v38  ;;  %v1811_v36 = vpop.f32.mrb[18].mxu0  ;;  %v2511_v33 = vmul.f32 %v2122_v35, %v2455_v37  ;;  %v2535_v28 = vmul.f32 %v2148_v47, %v2467_v29  ;;  %v2541_v6 = vmul.f32 %v2109_v27, %v2469_v14  ;;  %v3340_v22 = vrot.slane %v2467_v29, 7 }
 0x111   : > { %3307 = vst [vmem:[#allocation35_spill] sm:$0xff] %v2507_v56  ;;  %3309 = vst [vmem:[#allocation37_spill] sm:$0xff] %v2515_v7  ;;  %vm2520_vm13 = vcmp.ge.s32.totalorder %v3310_v46, 1  ;;  %v533_v38 = vpop.f32.mrb[19].mxu0  ;;  %v2527_v56 = vmul.f32 %v2109_v27, %v2467_v29  ;;  %v2545_v9 = vmul.f32 %v2122_v35, %v2469_v14  ;;  %v539_v7 = vadd.f32 %v1810_v3, %v2157_v51 }
 0x112   : > { %3308 = vst [vmem:[#allocation36_spill] sm:$0xff] %v2511_v33  ;;  %v2531_v33 = vmul.f32 %v2122_v35, %v2467_v29  ;;  %3315 = vst [vmem:[#allocation40_spill] sm:$0xff] %v2535_v28  ;;  %v3321_v28 = vand.u32 15, %v2160_v52  ;;  %v542_v0 = vadd.f32 %v1811_v36, %v2157_v51  ;;  %v3328_v52 = vrot.slane %v2357_v24, 1 }
 0x113   : > { %3313 = vst [vmem:[#allocation38_spill] sm:$0xff] %v2527_v56  ;;  %3316 = vst [vmem:[#allocation41_spill] sm:$0xff] %v2541_v6  ;;  %v3318_v56 = vand.u32 15, %v2138_v41  ;;  %v531_v6 = vadd.f32 %v2157_v51, %v530_v12  ;;  %v3324_v41 = vand.u32 15, %v2169_v57  ;;  %v3330_v12 = vrot.slane %v2309_v26, 1 }
 0x114   : > { %3314 = vst [vmem:[#allocation39_spill] sm:$0xff] %v2531_v33  ;;  %3317 = vst [vmem:[#allocation42_spill] sm:$0xff] %v2545_v9  ;;  %vm2555_vm15 = vcmp.le.s32.totalorder %v3321_v28, 14  ;;  %v534_v9 = vadd.f32 %v2157_v51, %v533_v38  ;;  %v2573_v28 = vsel %vm987_vm3, %v3328_v52, %v976_v23  ;;  %v3329_v3 = vmov %v3328_v52 }
 0x115   : > { %vm2549_vm14 = vcmp.le.s32.totalorder %v3318_v56, 14  ;;  %vm2565_vm0 = vcmp.ge.s32.totalorder %v3324_v41, 1  ;;  %v3325_v56 = vmov 0  ;;  %v999_v36 = vsel %vm987_vm3, %v3330_v12, %v3329_v3 }
 0x116   : > { %v3326_v56 = vsel %vm2565_vm0, 4294967295, %v3325_v56  ;;  %v3331_v51 = vmov %v3330_v12  ;;  %v3332_v57 = vrot.slane %v2275_v54, 1  ;;  %v3334_v23 = vrot.slane %v2311_v31, 1 }
 0x117   : > { %3327 = vst [vmem:[#allocation43_spill] sm:$0xff] %v3326_v56  ;;  %v563_v58 = vmax.f32 %v539_v7, 0.0  ;;  %v2595_v34 = vmax.f32 %v531_v6, 0.0  ;;  %v564_v25 = vmax.f32 %v542_v0, 0.0  ;;  %v2597_v3 = vmax.f32 %v534_v9, 0.0 }
 0x118   : > { %v2587_v38 = vsel %vm987_vm3, %v3332_v57, %v3331_v51  ;;  %v3333_v41 = vmov %v3332_v57  ;;  %v2601_v12 = vmul.f32 %v2148_v47, %v2469_v14  ;;  %v3337_v51 = vmov %v3334_v23 }
 0x119   : > { %v1001_v52 = vsel %vm987_vm3, %v3334_v23, %v3333_v41  ;;  %3335 = vst [vmem:[#allocation44_spill] sm:$0xff] %v2595_v34  ;;  %v3338_v57 = vrot.slane %v2277_v20, 1  ;;  %v2617_v0 = vsel %vm2437_vm10, %v999_v36, 0.0  ;;  %v884_v6 = vrot.slane %v563_v58, 7 }
 0x11a   : > { %3336 = vst [vmem:[#allocation45_spill] sm:$0xff] %v2601_v12  ;;  %v2613_v7 = vsel %vm2431_vm9, %v1001_v52, 0.0  ;;  %v985_v9 = vrot.slane %v563_v58, 1  ;;  %v882_v41 = vrot.slane %v2595_v34, 7  ;;  %v2622_v23 = vsel %vm2459_vm11, %v997_v42, 0.0 }
 0x11b   : > { %v2609_v32 = vsel %vm987_vm3, %v3338_v57, %v3337_v51  ;;  %v2625_v12 = vmul.f32 %v2148_v47, %v563_v58  ;;  %v3243_v51 = vrot.slane %v2595_v34, 1  ;;  %v1200_v30 = vmul.f32 %v2122_v35, %v2595_v34 }
 0x11c   : > { %v885_v52 = vrot.slane %v564_v25, 7  ;;  %v890_v36 = vsel %vm886_vm2, %v3340_v22, %v882_v41  ;;  %v1290_v57 = vmul.f32 %v2148_v47, %v2595_v34  ;;  %v986_v44 = vrot.slane %v564_v25, 1 }
 0x11d   : > { %3339 = vst [vmem:[#allocation46_spill] sm:$0xff] %v2625_v12  ;;  %v883_v42 = vrot.slane %v2597_v3, 7  ;;  %v963_v58 = vsel %vm2501_vm12, %v890_v36, 0.0  ;;  %v3341_v12 = vrot.slane %v2467_v29, 1  ;;  %v3342_v22 = vrot.slane %v2211_v18, 7 }
 0x11e   : > { %v887_v16 = vsel %vm886_vm2, %v884_v6, %v885_v52  ;;  %v1180_v53 = vmul.f32 %v2143_v43, %v963_v58  ;;  %v1270_v11 = vmul.f32 %v2150_v48, %v963_v58  ;;  %v1293_v34 = vmul.f32 %v2148_v47, %v564_v25 }
 0x11f   : > { %v991_v14 = vsel %vm987_vm3, %v3341_v12, %v3243_v51  ;;  %v906_v37 = vsel %vm886_vm2, %v885_v52, %v3342_v22  ;;  %v2658_v12 = vsel %vm987_vm3, %v985_v9, %v986_v44  ;;  %v3344_v51 = vrot.slane %v2211_v18, 1  ;;  %v2679_v18 = vld [vmem:[%s3221_s3 + $0x8] ss:$0 sm:$0xff] }
 0x120   : > { %v947_v36 = vsel %vm2520_vm13, %v906_v37, 0.0  ;;  %3343 = vst [vmem:[#allocation47_spill] sm:$0xff] %v2658_v12  ;;  %v1273_v22 = vmul.f32 %v2150_v48, %v887_v16  ;;  %v2668_v58 = vsel %vm2549_vm14, %v991_v14, 0.0  ;;  %v2670_v37 = vadd.f32 %v1200_v30, %v1180_v53 }
 0x121   : > { %v1007_v29 = vsel %vm987_vm3, %v986_v44, %v3344_v51  ;;  %v1074_v52 = vmul.f32 %v2133_v39, %v947_v36  ;;  %v2672_v25 = vadd.f32 %v1290_v57, %v1270_v11  ;;  %v2687_v53 = vsel %vm886_vm2, %v883_v42, %v884_v6 }
 0x122   : > { %3345 = vst [vmem:[#allocation48_spill] sm:$0xff] %v2670_v37  ;;  %v1067_v60 = vsel %vm2555_vm15, %v1007_v29, 0.0  ;;  %v1309_v16 = vadd.f32 %v1293_v34, %v1273_v22  ;;  %3346 = vst [vmem:[#allocation49_spill] sm:$0xff] %v2687_v53  ;;  %v889_v14 = vsel %vm886_vm2, %v882_v41, %v883_v42  ;;  %v3246_v46 = vrot.slane %v2597_v3, 1 }
 0x123   : > { %v2682_v51 = vadd.f32 %v2229_v1, %v1074_v52  ;;  %v1329_v33 = vmul.f32 %v2679_v18, %v1067_v60  ;;  %v1201_v1 = vmul.f32 %v2122_v35, %v2597_v3  ;;  %v1181_v34 = vmul.f32 %v2143_v43, %v889_v14 }
 0x124   : > { %v1271_v57 = vmul.f32 %v2150_v48, %v889_v14  ;;  %v1291_v6 = vmul.f32 %v2148_v47, %v2597_v3  ;;  %v2707_v41 = vsel %vm987_vm3, %v3246_v46, %v985_v9  ;;  %v1078_v44 = vmul.f32 %v2133_v39, %v2465_v2 }
 0x125   : > { %v2697_v30 = vadd.f32 %v1329_v33, %v1309_v16  ;;  %v1079_v42 = vmul.f32 %v2133_v39, %v2371_v55  ;;  %v2715_v11 = vmul.f32 %v2133_v39, %v2487_v61  ;;  %v2717_v36 = vadd.f32 %v1201_v1, %v1181_v34 }
 0x126   : > { %v2719_v52 = vadd.f32 %v1291_v6, %v1271_v57  ;;  %v2723_v22 = vmul.f32 %v2133_v39, %v2445_v8  ;;  %v1098_v9 = vmul.f32 %v2109_v27, %v2277_v20  ;;  %v1099_v60 = vmul.f32 %v2109_v27, %v2311_v31 }
 0x127   : > { %3347 = vst [vmem:[#allocation50_spill] sm:$0xff] %v2697_v30  ;;  %3348 = vst [vmem:[#allocation51_spill] sm:$0xff] %v2717_v36  ;;  %v1134_v16 = vmul.f32 %v2135_v40, %v2609_v32  ;;  %v1135_v33 = vmul.f32 %v2135_v40, %v2613_v7  ;;  %v2735_v14 = vmul.f32 %v2135_v40, %v2573_v28  ;;  %v3352_v36 = vand.u32 15, %v2178_v63 }
 0x128   : > { %v1114_v1 = vadd.f32 %v1098_v9, %v1078_v44  ;;  %v2739_v34 = vmul.f32 %v2135_v40, %v2622_v23  ;;  %v1168_v57 = vmul.f32 %v2143_v43, %v2465_v2  ;;  %v1169_v27 = vmul.f32 %v2143_v43, %v2371_v55 }
 0x129   : > { %v1115_v31 = vadd.f32 %v1099_v60, %v1079_v42  ;;  %v1170_v6 = vmul.f32 %v2143_v43, %v2473_v19  ;;  %v1171_v29 = vmul.f32 %v2143_v43, %v2365_v15  ;;  %v1172_v44 = vmul.f32 %v2143_v43, %v2487_v61 }
 0x12a   : > { %v3349_v9 = vand.u32 15, %v2175_v62  ;;  %v1150_v30 = vadd.f32 %v1134_v16, %v1114_v1  ;;  %v1173_v12 = vmul.f32 %v2143_v43, %v2445_v8  ;;  %v1190_v42 = vmul.f32 %v2122_v35, %v2275_v54 }
 0x12b   : > { %v1191_v60 = vmul.f32 %v2122_v35, %v2309_v26  ;;  %vm2765_vm5 = vcmp.le.s32.totalorder %v3352_v36, 14  ;;  %v1151_v62 = vadd.f32 %v1135_v33, %v1115_v31  ;;  %v1205_v16 = vadd.f32 %v2347_v45, %v1169_v27 }
 0x12c   : > { %vm2753_vm4 = vcmp.ge.s32.totalorder %v3349_v9, 1  ;;  %v1204_v9 = vadd.f32 %v2307_v59, %v1168_v57  ;;  %v1224_v1 = vmul.f32 %v2209_v17, %v2609_v32  ;;  %v1206_v56 = vadd.f32 %v1190_v42, %v1170_v6 }
 0x12d   : > { %v1207_v37 = vadd.f32 %v1191_v60, %v1171_v29  ;;  %v1225_v54 = vmul.f32 %v2209_v17, %v2613_v7  ;;  %v1226_v35 = vmul.f32 %v2209_v17, %v2587_v38  ;;  %v1227_v63 = vmul.f32 %v2209_v17, %v2617_v0 }
 0x12e   : > { %v1228_v26 = vmul.f32 %v2209_v17, %v2573_v28  ;;  %v1229_v45 = vmul.f32 %v2209_v17, %v2622_v23  ;;  %v2783_v59 = vadd.f32 %v1224_v1, %v1204_v9  ;;  %v1260_v33 = vmul.f32 %v2150_v48, %v2473_v19 }
 0x12f   : > { %v2785_v36 = vadd.f32 %v1225_v54, %v1205_v16  ;;  %v1242_v29 = vadd.f32 %v1226_v35, %v1206_v56  ;;  %v1261_v57 = vmul.f32 %v2150_v48, %v2365_v15  ;;  %v1243_v27 = vadd.f32 %v1227_v63, %v1207_v37  ;;  %v3392_v35 = vld [vmem:[#allocation26_spill] sm:$0xff] }
 0x130   : > { %v1262_v31 = vmul.f32 %v2150_v48, %v2487_v61  ;;  %v1263_v6 = vmul.f32 %v2150_v48, %v2445_v8  ;;  %v1282_v42 = vmul.f32 %v2148_v47, %v2357_v24  ;;  %v1283_v60 = vmul.f32 %v2148_v47, %v2361_v50 }
 0x131   : > { %v1296_v56 = vadd.f32 %v2301_v10, %v1260_v33  ;;  %v1297_v9 = vadd.f32 %v2341_v49, %v1261_v57  ;;  %v1316_v16 = vmul.f32 %v2679_v18, %v2587_v38  ;;  %v1317_v61 = vmul.f32 %v2679_v18, %v2617_v0 }
 0x132   : > { %v1298_v37 = vadd.f32 %v1282_v42, %v1262_v31  ;;  %v1318_v8 = vmul.f32 %v2679_v18, %v2573_v28  ;;  %v1319_v24 = vmul.f32 %v2679_v18, %v2622_v23  ;;  %v1299_v1 = vadd.f32 %v1283_v60, %v1263_v6  ;;  %v3362_v31 = vld [vmem:[#allocation16_spill] sm:$0xff]  ;;  %v3366_v42 = vld [vmem:[#allocation29_spill] sm:$0xff] }
 0x133   : > { %v2809_v54 = vadd.f32 %v1316_v16, %v1296_v56  ;;  %v1350_v47 = vadd.f32 %v1242_v29, %v1150_v30  ;;  %v1351_v10 = vadd.f32 %v1243_v27, %v1151_v62  ;;  %v3355_v49 = vand.u32 15, %v2189_v4 }
 0x134   : > { %v3358_v63 = vand.u32 15, %v2192_v5  ;;  %v2823_v28 = vadd.f32 %v1317_v61, %v1297_v9  ;;  %v1334_v23 = vadd.f32 %v1318_v8, %v1298_v37  ;;  %v3361_v57 = vrot.slane %v2359_v13, 7 }
 0x135   : > { %vm2813_vm6 = vcmp.ge.s32.totalorder %v3355_v49, 1  ;;  %v3363_v30 = vrot.slane %v3362_v31, 7  ;;  %v3365_v29 = vrot.slane %v2361_v50, 7  ;;  %v1335_v27 = vadd.f32 %v1319_v24, %v1299_v1  ;;  %v2868_v49 = vld [vmem:[%s3222_s4] ss:$0 sm:$0xff] }
 0x136   : > { %vm2819_vm7 = vcmp.le.s32.totalorder %v3358_v63, 14  ;;  %v3367_v60 = vrot.slane %v3366_v42, 1  ;;  %v3368_v56 = vrot.slane %v2359_v13, 1  ;;  %v3370_v37 = vrot.slane %v3362_v31, 1 }
 0x137   : > { %v2831_v4 = vsel %vm886_vm2, %v3363_v30, %v3361_v57  ;;  %v3364_v62 = vmov %v3363_v30  ;;  %v1366_v61 = vadd.f32 %v1350_v47, %v1334_v23  ;;  %v1080_v8 = vmul.f32 %v2133_v39, %v2473_v19  ;;  %v3371_v47 = vld [vmem:[#allocation22_spill] sm:$0xff]  ;;  %v3372_v19 = vld [vmem:[#allocation13_spill] sm:$0xff]  ;;  %v3373_v30 = vld [vmem:[#allocation15_spill] sm:$0xff] }
 0x138   : > { %v896_v5 = vsel %vm886_vm2, %v3365_v29, %v3364_v62  ;;  %v995_v9 = vsel %vm987_vm3, %v3368_v56, %v3367_v60  ;;  %v3369_v16 = vmov %v3368_v56  ;;  %v1081_v24 = vmul.f32 %v2133_v39, %v2365_v15 }
 0x139   : > { %v2841_v6 = vsel %vm2753_vm4, %v896_v5, 0.0  ;;  %v2855_v50 = vsel %vm987_vm3, %v3370_v37, %v3369_v16  ;;  %v2859_v46 = vsel %vm2765_vm5, %v995_v9, 0.0  ;;  %v1367_v1 = vadd.f32 %v1351_v10, %v1335_v27  ;;  %v3374_v10 = vld [vmem:[#allocation27_spill] sm:$0xff]  ;;  %v3375_v16 = vld [vmem:[#allocation20_spill] sm:$0xff] }
 0x13a   : > { %v1136_v63 = vmul.f32 %v2135_v40, %v2587_v38  ;;  %v1137_v53 = vmul.f32 %v2135_v40, %v2617_v0  ;;  %v1208_v23 = vadd.f32 %v3371_v47, %v1172_v44  ;;  %v1389_v57 = vadd.f32 %v2868_v49, %v1366_v61  ;;  %v3376_v61 = vld [vmem:[#allocation25_spill] sm:$0xff]  ;;  %v3377_v47 = vld [vmem:[#allocation31_spill] sm:$0xff] }
 0x13b   : > { %v1116_v31 = vadd.f32 %v3372_v19, %v1080_v8  ;;  %v1117_v15 = vadd.f32 %v3373_v30, %v1081_v24  ;;  %v1209_v62 = vadd.f32 %v3374_v10, %v1173_v12  ;;  %v1390_v29 = vadd.f32 %v2868_v49, %v1367_v1 }
 0x13c   : > { %v1244_v5 = vadd.f32 %v1228_v26, %v1208_v23  ;;  %v1264_v27 = vmul.f32 %v2150_v48, %v2841_v6  ;;  %v1265_v38 = vmul.f32 %v2150_v48, %v2831_v4  ;;  %v1405_v0 = vmax.f32 %v1389_v57, 0.0 }
 0x13d   : > { %v1152_v60 = vadd.f32 %v1136_v63, %v1116_v31  ;;  %v1153_v44 = vadd.f32 %v1137_v53, %v1117_v15  ;;  %v1245_v56 = vadd.f32 %v1229_v45, %v1209_v62  ;;  %v1406_v9 = vmax.f32 %v1390_v29, 0.0  ;;  %v3380_v63 = vld [vmem:[#allocation3_spill] sm:$0xff]  ;;  %v3386_v29 = vld [vmem:[#allocation28_spill] sm:$0xff] }
 0x13e   : > { %v1300_v37 = vadd.f32 %v3375_v16, %v1264_v27  ;;  %v1301_v8 = vadd.f32 %v3376_v61, %v1265_v38  ;;  %v1320_v12 = vmul.f32 %v2679_v18, %v2855_v50  ;;  %v1321_v26 = vmul.f32 %v2679_v18, %v2859_v46 }
 0x13f   : > { %v1352_v24 = vadd.f32 %v1244_v5, %v1152_v60  ;;  %v1353_v1 = vadd.f32 %v1245_v56, %v1153_v44  ;;  %v3378_v23 = vrot.slane %v3377_v47, 7  ;;  %v3379_v57 = vrot.slane %v3366_v42, 7 }
 0x140   : > { %v3381_v53 = vand.u32 15, %v3380_v63  ;;  %v1419_v31 = vpack.c.bf16 %v1406_v9, %v1405_v0  ;;  %v1336_v30 = vadd.f32 %v1320_v12, %v1300_v37  ;;  %v3385_v10 = vrot.slane %v2359_v13, 7  ;;  %v3391_v37 = vld [vmem:[#allocation21_spill] sm:$0xff] }
 0x141   : > { %v2896_v45 = vsel %vm886_vm2, %v3379_v57, %v3378_v23  ;;  %v3384_v15 = vmov %v3379_v57  ;;  %v3387_v5 = vrot.slane %v3386_v29, 1  ;;  %v3388_v27 = vrot.slane %v3377_v47, 1 }
 0x142   : > { %vm2900_vm8 = vcmp.ge.s32.totalorder %v3381_v53, 1  ;;  %v894_v62 = vsel %vm886_vm2, %v3385_v10, %v3384_v15  ;;  %v1337_v60 = vadd.f32 %v1321_v26, %v1301_v8  ;;  %v3390_v56 = vrot.slane %v3366_v42, 1  ;;  %1832 = vmatprep.mubr.bf16.mxu1 %v1419_v31 }
 0x143   : > { %v993_v38 = vsel %vm987_vm3, %v3388_v27, %v3387_v5  ;;  %v2918_v44 = vsel %vm2813_vm6, %v894_v62, 0.0  ;;  %v3389_v0 = vmov %v3388_v27  ;;  %v1368_v16 = vadd.f32 %v1352_v24, %v1336_v30 }
 0x144   : > { %v2926_v13 = vsel %vm987_vm3, %v3390_v56, %v3389_v0  ;;  %v2930_v9 = vsel %vm2819_vm7, %v993_v38, 0.0  ;;  %v1118_v61 = vadd.f32 %v3391_v37, %v2715_v11  ;;  %v1119_v8 = vadd.f32 %v3392_v35, %v2723_v22  ;;  %v3393_v22 = vld [vmem:[#allocation19_spill] sm:$0xff]  ;;  %v3395_v38 = vld [vmem:[#allocation37_spill] sm:$0xff] }
 0x145   : > { %v1174_v12 = vmul.f32 %v2143_v43, %v2841_v6  ;;  %v1369_v42 = vadd.f32 %v1353_v1, %v1337_v60  ;;  %v1175_v26 = vmul.f32 %v2143_v43, %v2831_v4  ;;  %v1230_v33 = vmul.f32 %v2209_v17, %v2855_v50  ;;  %v3394_v1 = vld [vmem:[#allocation24_spill] sm:$0xff]  ;;  %v3396_v0 = vld [vmem:[#allocation45_spill] sm:$0xff] }
 0x146   : > { %v1231_v23 = vmul.f32 %v2209_v17, %v2859_v46  ;;  %v1391_v24 = vadd.f32 %v2868_v49, %v1368_v16  ;;  %v1154_v11 = vadd.f32 %v2735_v14, %v1118_v61  ;;  %v1155_v57 = vadd.f32 %v2739_v34, %v1119_v8  ;;  %v3397_v16 = vld [vmem:[#allocation4_spill] sm:$0xff]  ;;  %v3401_v8 = vld [vmem:[#allocation30_spill] sm:$0xff] }
 0x147   : > { %v1210_v63 = vadd.f32 %v3393_v22, %v1174_v12  ;;  %v1392_v53 = vadd.f32 %v2868_v49, %v1369_v42  ;;  %v1211_v31 = vadd.f32 %v3394_v1, %v1175_v26  ;;  %v1266_v30 = vmul.f32 %v2150_v48, %v2918_v44 }
 0x148   : > { %v1267_v15 = vmul.f32 %v2150_v48, %v2896_v45  ;;  %v1407_v10 = vmax.f32 %v1391_v24, 0.0  ;;  %v1322_v5 = vmul.f32 %v2679_v18, %v2926_v13  ;;  %v1323_v14 = vmul.f32 %v2679_v18, %v2930_v9 }
 0x149   : > { %v1246_v62 = vadd.f32 %v1230_v33, %v1210_v63  ;;  %v1408_v34 = vmax.f32 %v1392_v53, 0.0  ;;  %v1247_v27 = vadd.f32 %v1231_v23, %v1211_v31  ;;  %v1302_v60 = vadd.f32 %v3395_v38, %v1266_v30 }
 0x14a   : > { %v1303_v56 = vadd.f32 %v3396_v0, %v1267_v15  ;;  %v3398_v37 = vand.u32 15, %v3397_v16  ;;  %v3402_v12 = vrot.slane %v3401_v8, 7  ;;  %v3403_v42 = vrot.slane %v3386_v29, 7 }
 0x14b   : > { %v1354_v35 = vadd.f32 %v1246_v62, %v1154_v11  ;;  %v3405_v23 = vrot.slane %v3377_v47, 7  ;;  %v3406_v22 = vrot.slane %v3401_v8, 1  ;;  %v3407_v63 = vrot.slane %v3386_v29, 1 }
 0x14c   : > { %vm2962_vm9 = vcmp.le.s32.totalorder %v3398_v37, 14  ;;  %v2972_v26 = vsel %vm886_vm2, %v3403_v42, %v3402_v12  ;;  %v3404_v33 = vmov %v3403_v42  ;;  %v1420_v53 = vpack.c.bf16 %v1408_v34, %v1407_v10  ;;  %v3412_v42 = vld [vmem:[#allocation2_spill] sm:$0xff] }
 0x14d   : > { %v892_v24 = vsel %vm886_vm2, %v3405_v23, %v3404_v33  ;;  %v2986_v11 = vsel %vm987_vm3, %v3407_v63, %v3406_v22  ;;  %v1338_v1 = vadd.f32 %v1322_v5, %v1302_v60  ;;  %v1339_v31 = vadd.f32 %v1323_v14, %v1303_v56  ;;  %v3409_v14 = vld [vmem:[#allocation23_spill] sm:$0xff]  ;;  %v3410_v60 = vld [vmem:[#allocation36_spill] sm:$0xff]  ;;  %v3431_v23 = vld [vmem:[#allocation6_spill] sm:$0xff] }
 0x14e   : > { %v1355_v30 = vadd.f32 %v1247_v27, %v1155_v57  ;;  %v2990_v15 = vsel %vm2900_vm8, %v892_v24, 0.0  ;;  %v1084_v47 = vmul.f32 %v2133_v39, %v2841_v6  ;;  %v1085_v62 = vmul.f32 %v2133_v39, %v2831_v4  ;;  %1833 = vmatmul.mubr.bf16.vlgmr.msra.gmra.mrb[0].mxu1 %v1420_v53  ;;  %v3408_v57 = vld [vmem:[#allocation18_spill] sm:$0xff] }
 0x14f   : > { %v1140_v29 = vmul.f32 %v2135_v40, %v2855_v50  ;;  %v1370_v38 = vadd.f32 %v1354_v35, %v1338_v1  ;;  %v1141_v10 = vmul.f32 %v2135_v40, %v2859_v46  ;;  %v1176_v19 = vmul.f32 %v2143_v43, %v2918_v44  ;;  %v3411_v35 = vld [vmem:[#allocation42_spill] sm:$0xff] }
 0x150   : > { %v1371_v0 = vadd.f32 %v1355_v30, %v1339_v31  ;;  %v1120_v5 = vadd.f32 %v3408_v57, %v1084_v47  ;;  %v1121_v34 = vadd.f32 %v3409_v14, %v1085_v62  ;;  %v1177_v6 = vmul.f32 %v2143_v43, %v2896_v45  ;;  %v3416_v31 = vld [vmem:[#allocation34_spill] sm:$0xff]  ;;  %v3419_v57 = vld [vmem:[#allocation44_spill] sm:$0xff] }
 0x151   : > { %v1232_v4 = vmul.f32 %v2209_v17, %v2926_v13  ;;  %v1393_v50 = vadd.f32 %v2868_v49, %v1370_v38  ;;  %v1212_v56 = vadd.f32 %v3410_v60, %v1176_v19  ;;  %v1233_v46 = vmul.f32 %v2209_v17, %v2930_v9  ;;  %v3417_v38 = vld [vmem:[#allocation40_spill] sm:$0xff] }
 0x152   : > { %v1394_v27 = vadd.f32 %v2868_v49, %v1371_v0  ;;  %v1156_v16 = vadd.f32 %v1140_v29, %v1120_v5  ;;  %v1157_v37 = vadd.f32 %v1141_v10, %v1121_v34  ;;  %v1213_v8 = vadd.f32 %v3411_v35, %v1177_v6  ;;  %v3422_v35 = vld [vmem:[#allocation41_spill] sm:$0xff] }
 0x153   : > { %v1268_v12 = vmul.f32 %v2150_v48, %v2990_v15  ;;  %v3413_v33 = vand.u32 15, %v3412_v42  ;;  %v1409_v24 = vmax.f32 %v1393_v50, 0.0  ;;  %v1248_v63 = vadd.f32 %v1232_v4, %v1212_v56  ;;  %v3423_v42 = vld [vmem:[#allocation33_spill] sm:$0xff] }
 0x154   : > { %v1410_v22 = vmax.f32 %v1394_v27, 0.0  ;;  %v1269_v53 = vmul.f32 %v2150_v48, %v2972_v26  ;;  %v1249_v1 = vadd.f32 %v1233_v46, %v1213_v8  ;;  %v1324_v47 = vmul.f32 %v2679_v18, %v2986_v11 }
 0x155   : > { %vm3018_vm2 = vcmp.le.s32.totalorder %v3413_v33, 14  ;;  %v1304_v30 = vadd.f32 %v3416_v31, %v1268_v12  ;;  %v1325_v62 = vmul.f32 %v2679_v18, %v2668_v58  ;;  %v1356_v10 = vadd.f32 %v1248_v63, %v1156_v16  ;;  %v3421_v16 = vld [vmem:[#allocation35_spill] sm:$0xff] }
 0x156   : > { %v1421_v29 = vpack.c.bf16 %v1410_v22, %v1409_v24  ;;  %v1305_v0 = vadd.f32 %v3417_v38, %v1269_v53  ;;  %v3418_v19 = vrot.slane %v2597_v3, 1  ;;  %v3420_v5 = vrot.slane %v3419_v57, 1  ;;  %v3424_v24 = vld [vmem:[#allocation39_spill] sm:$0xff] }
 0x157   : > { %v1340_v34 = vadd.f32 %v1324_v47, %v1304_v30  ;;  %v1357_v6 = vadd.f32 %v1249_v1, %v1157_v37  ;;  %v3041_v4 = vsel %vm2962_vm9, %v2707_v41, 0.0  ;;  %v1086_v50 = vmul.f32 %v2133_v39, %v2918_v44 }
 0x158   : > { %v3036_v14 = vsel %vm987_vm3, %v3420_v5, %v3418_v19  ;;  %1836 = vmatprep.mubr.bf16.mxu1 %v1421_v29  ;;  %v1341_v27 = vadd.f32 %v1325_v62, %v1305_v0  ;;  %v1087_v3 = vmul.f32 %v2133_v39, %v2896_v45  ;;  %v1142_v60 = vmul.f32 %v2135_v40, %v2926_v13  ;;  %v3426_v29 = vld [vmem:[#allocation5_spill] sm:$0xff] }
 0x159   : > { %v1143_v56 = vmul.f32 %v2135_v40, %v2930_v9  ;;  %v1372_v46 = vadd.f32 %v1356_v10, %v1340_v34  ;;  %v1122_v37 = vadd.f32 %v3421_v16, %v1086_v50  ;;  %v1178_v41 = vmul.f32 %v2143_v43, %v2990_v15 }
 0x15a   : > { %v1179_v44 = vmul.f32 %v2143_v43, %v2972_v26  ;;  %v1373_v61 = vadd.f32 %v1357_v6, %v1341_v27  ;;  %v1123_v8 = vadd.f32 %v3422_v35, %v1087_v3  ;;  %v1234_v45 = vmul.f32 %v2209_v17, %v2986_v11  ;;  %v3428_v27 = vld [vmem:[#allocation8_spill] sm:$0xff] }
 0x15b   : > { %v1235_v13 = vmul.f32 %v2209_v17, %v2668_v58  ;;  %v1395_v9 = vadd.f32 %v2868_v49, %v1372_v46  ;;  %v1158_v12 = vadd.f32 %v1142_v60, %v1122_v37  ;;  %v1214_v33 = vadd.f32 %v3423_v42, %v1178_v41 }
 0x15c   : > { %v1215_v22 = vadd.f32 %v3424_v24, %v1179_v44  ;;  %v1396_v63 = vadd.f32 %v2868_v49, %v1373_v61  ;;  %v1159_v53 = vadd.f32 %v1143_v56, %v1123_v8  ;;  %v1326_v43 = vmul.f32 %v2679_v18, %v3036_v14  ;;  %v3430_v56 = vld [vmem:[#allocation11_spill] sm:$0xff] }
 0x15d   : > { %v1327_v1 = vmul.f32 %v2679_v18, %v3041_v4  ;;  %v1411_v31 = vmax.f32 %v1395_v9, 0.0  ;;  %v1250_v30 = vadd.f32 %v1234_v45, %v1214_v33  ;;  %v3425_v62 = vrot.slane %v2277_v20, 1  ;;  %v3432_v44 = vld [vmem:[#allocation7_spill] sm:$0xff]  ;;  %v3434_v9 = vld [vmem:[#allocation17_spill] sm:$0xff] }
 0x15e   : > { %v1251_v47 = vadd.f32 %v1235_v13, %v1215_v22  ;;  %v3427_v38 = vrot.slane %v3426_v29, 1  ;;  %v1412_v10 = vmax.f32 %v1396_v63, 0.0  ;;  %v1342_v19 = vadd.f32 %v1326_v43, %v2672_v25  ;;  %v3436_v22 = vld [vmem:[#allocation12_spill] sm:$0xff] }
 0x15f   : > { %v1343_v57 = vadd.f32 %v1327_v1, %v2719_v52  ;;  %v1358_v34 = vadd.f32 %v1250_v30, %v1158_v12  ;;  %v1146_v20 = vadd.f32 %v3428_v27, %v2682_v51  ;;  %v1238_v46 = vadd.f32 %v3430_v56, %v3429_v21  ;;  %v3433_v51 = vld [vmem:[#allocation14_spill] sm:$0xff]  ;;  %v3441_v56 = vld [vmem:[#allocation49_spill] sm:$0xff] }
 0x160   : > { %v1003_v0 = vsel %vm987_vm3, %v3427_v38, %v3425_v62  ;;  %v1359_v6 = vadd.f32 %v1251_v47, %v1159_v53  ;;  %v1422_v3 = vpack.c.bf16 %v1412_v10, %v1411_v31  ;;  %v1258_v25 = vmul.f32 %v2150_v48, %v2465_v2 }
 0x161   : > { %v1051_v5 = vsel %vm3018_vm2, %v1003_v0, 0.0  ;;  %v1374_v52 = vadd.f32 %v1358_v34, %v1342_v19  ;;  %v1259_v41 = vmul.f32 %v2150_v48, %v2371_v55  ;;  %v1314_v8 = vmul.f32 %v2679_v18, %v2609_v32  ;;  %v3435_v55 = vld [vmem:[#allocation10_spill] sm:$0xff]  ;;  %v3437_v0 = vld [vmem:[#allocation32_spill] sm:$0xff] }
 0x162   : > { %v1133_v50 = vmul.f32 %v2135_v40, %v1051_v5  ;;  %v1223_v60 = vmul.f32 %v2209_v17, %v1051_v5  ;;  %v1375_v16 = vadd.f32 %v1359_v6, %v1343_v57  ;;  %1837 = vmatmul.mubr.bf16.gmra.mrb[4].mxu1 %v1422_v3  ;;  %v1294_v35 = vadd.f32 %v3433_v51, %v1258_v25  ;;  %v3438_v57 = vld [vmem:[#allocation38_spill] sm:$0xff]  ;;  %v3439_v3 = vld [vmem:[#allocation48_spill] sm:$0xff]  ;;  %v3443_v25 = vld [vmem:[#allocation51_spill] sm:$0xff] }
 0x163   : > { %v1315_v45 = vmul.f32 %v2679_v18, %v2613_v7  ;;  %v1397_v2 = vadd.f32 %v2868_v49, %v1374_v52  ;;  %v1295_v12 = vadd.f32 %v3434_v9, %v1259_v41  ;;  %v1346_v42 = vadd.f32 %v1238_v46, %v1146_v20  ;;  %v1927_v9 = vld [vmem:[%s2054_s16 + $0x20] sm:$0xff]  }
 0x164   : > { %v1149_v37 = vadd.f32 %v1133_v50, %v3431_v23  ;;  %v1239_v61 = vadd.f32 %v1223_v60, %v3432_v44  ;;  %v1398_v13 = vadd.f32 %v2868_v49, %v1375_v16  ;;  %v1330_v33 = vadd.f32 %v1314_v8, %v1294_v35 }
 0x165   : > { %v1348_v63 = vadd.f32 %v2783_v59, %v3436_v22  ;;  %v1413_v43 = vmax.f32 %v1397_v2, 0.0  ;;  %v1331_v1 = vadd.f32 %v1315_v45, %v1295_v12  ;;  %v1088_v7 = vmul.f32 %v2133_v39, %v2990_v15 }
 0x166   : > { %v1347_v24 = vadd.f32 %v1239_v61, %v3435_v55  ;;  %v1349_v53 = vadd.f32 %v2785_v36, %v1149_v37  ;;  %v1414_v32 = vmax.f32 %v1398_v13, 0.0  ;;  %v1362_v31 = vadd.f32 %v1346_v42, %v1330_v33  ;;  %v3445_v37 = vld [vmem:[#allocation46_spill] sm:$0xff]  ;;  %v1928_v33 = vld [vmem:[%s2054_s16 + $0x18] sm:$0xff]  }
 0x167   : > { %v1364_v30 = vadd.f32 %v1348_v63, %v2809_v54  ;;  %v1089_v62 = vmul.f32 %v2133_v39, %v2972_v26  ;;  %v1124_v59 = vadd.f32 %v3437_v0, %v1088_v7  ;;  %v1144_v36 = vmul.f32 %v2135_v40, %v2986_v11  ;;  %v3446_v61 = vld [vmem:[#allocation50_spill] sm:$0xff] }
 0x168   : > { %v1365_v47 = vadd.f32 %v1349_v53, %v2823_v28  ;;  %v1423_v29 = vpack.c.bf16 %v1414_v32, %v1413_v43  ;;  %v1363_v38 = vadd.f32 %v1347_v24, %v1331_v1  ;;  %v1385_v10 = vadd.f32 %v2868_v49, %v1362_v31  ;;  %v3140_v13 = vld [vmem:[%s3224_s6] ss:$0 sm:$0xff] }
 0x169   : > { %v1387_v19 = vadd.f32 %v2868_v49, %v1364_v30  ;;  %v1125_v54 = vadd.f32 %v3438_v57, %v1089_v62  ;;  %v1145_v39 = vmul.f32 %v2135_v40, %v2668_v58  ;;  %v1160_v26 = vadd.f32 %v1144_v36, %v1124_v59  ;;  %v1930_v59 = vld [vmem:[%s2054_s16 + $0x28] sm:$0xff]  }
 0x16a   : > { %v1388_v15 = vadd.f32 %v2868_v49, %v1365_v47  ;;  %1840 = vmatprep.mubr.bf16.mxu1 %v1423_v29  ;;  %v1386_v28 = vadd.f32 %v2868_v49, %v1363_v38  ;;  %v1236_v5 = vmul.f32 %v2209_v17, %v3036_v14  ;;  %v1401_v34 = vmax.f32 %v1385_v10, 0.0  ;;  %v3444_v14 = vld [vmem:[#allocation47_spill] sm:$0xff]  ;;  %v1929_v29 = vld [vmem:[%s2054_s16 + $0x30] sm:$0xff]  }
 0x16b   : > { %v1403_v11 = vmax.f32 %v1387_v19, 0.0  ;;  %v1237_v50 = vmul.f32 %v2209_v17, %v3041_v4  ;;  %v1161_v20 = vadd.f32 %v1145_v39, %v1125_v54  ;;  %v3442_v46 = vsel %vm2565_vm0, %v3441_v56, 0.0 }
 0x16c   : > { %v1404_v6 = vmax.f32 %v1388_v15, 0.0  ;;  %v1402_v27 = vmax.f32 %v1386_v28, 0.0  ;;  %v1252_v60 = vadd.f32 %v1236_v5, %v3439_v3  ;;  %v1272_v40 = vmul.f32 %v2150_v48, %v3442_v46 }
 0x16d   : > { %v1253_v52 = vadd.f32 %v1237_v50, %v3443_v25  ;;  %v1328_v16 = vmul.f32 %v2679_v18, %v3444_v14  ;;  %v1599_v12 = vunpack.c.l.bf16 %v1927_v9  ;;  %v1597_v55 = vunpack.c.l.bf16 %v1928_v33 }
 0x16e   : > { %v1418_v58 = vpack.c.bf16 %v1404_v6, %v1403_v11  ;;  %v1417_v23 = vpack.c.bf16 %v1402_v27, %v1401_v34  ;;  %v1308_v17 = vadd.f32 %v3445_v37, %v1272_v40  ;;  %v1360_v4 = vadd.f32 %v1252_v60, %v1160_v26  ;;  %v1931_v27 = vld [vmem:[%s2054_s16 + $0x10] sm:$0xff]   ;;  %v1932_v60 = vld [vmem:[%s2054_s16 + $0x8] sm:$0xff]  }
 0x16f   : > { %v1361_v41 = vadd.f32 %v1253_v52, %v1161_v20  ;;  %v1600_v22 = vunpack.c.h.bf16 %v1927_v9  ;;  %v1598_v43 = vunpack.c.h.bf16 %v1928_v33  ;;  %v1603_v38 = vunpack.c.l.bf16 %v1929_v29 }
 0x170   : > { %1828 = vmatprep.mubr.bf16.mxu0 %v1417_v23  ;;  %v1344_v44 = vadd.f32 %v1328_v16, %v1308_v17  ;;  %v1601_v36 = vunpack.c.l.bf16 %v1930_v59  ;;  %v1604_v15 = vunpack.c.h.bf16 %v1929_v29  ;;  %v1602_v28 = vunpack.c.h.bf16 %v1930_v59 }
 0x171   : > { %1829 = vmatmul.mubr.bf16.vlgmr.msra.gmra.mrb[20].mxu0 %v1418_v58  ;;  %v1377_v51 = vadd.f32 %v1361_v41, %v3446_v61  ;;  %v1595_v20 = vunpack.c.l.bf16 %v1931_v27  ;;  %v1593_v21 = vunpack.c.l.bf16 %v1932_v60  ;;  %v1596_v40 = vunpack.c.h.bf16 %v1931_v27 }
 0x172   : > { %v1376_v48 = vadd.f32 %v1360_v4, %v1344_v44  ;;  %v1594_v52 = vunpack.c.h.bf16 %v1932_v60  ;;  %v1933_v44 = vld [vmem:[%s2054_s16 + $0x40] sm:$0xff]  }
 0x173   : > { %v1400_v35 = vadd.f32 %v2868_v49, %v1377_v51  ;;  %v1607_v61 = vunpack.c.l.bf16 %v1933_v44 }
 0x174   : > { %v1399_v8 = vadd.f32 %v2868_v49, %v1376_v48  ;;  %v1934_v48 = vld [vmem:[%s2054_s16 + $0x38] sm:$0xff]  }
 0x175   : > { %v1416_v45 = vmax.f32 %v1400_v35, 0.0  ;;  %v1605_v35 = vunpack.c.l.bf16 %v1934_v48 }
 0x176   : > { %v1415_v18 = vmax.f32 %v1399_v8, 0.0 }
 0x178   : > { %v1424_v2 = vpack.c.bf16 %v1416_v45, %v1415_v18  ;;  %v1608_v18 = vunpack.c.h.bf16 %v1933_v44 }
 0x17a   : > { %1841 = vmatmul.mubr.bf16.gmra.mrb[8].mxu1 %v1424_v2 }
 0x221   : > { %v1834_v42 = vpop.f32.mrb[0].mxu1 }
 0x222   : > { %v1555_v49 = vadd.f32 %v1834_v42, %v3140_v13  ;;  %v1546_v24 = vpop.f32.mrb[1].mxu1 }
 0x223   : > { %v1547_v63 = vadd.f32 %v3140_v13, %v1546_v24  ;;  %v1835_v53 = vpop.f32.mrb[2].mxu1 }
 0x224   : > { %v1615_v32 = vadd.f32 %v1599_v12, %v1555_v49  ;;  %v1558_v1 = vadd.f32 %v1835_v53, %v3140_v13  ;;  %v1549_v7 = vpop.f32.mrb[3].mxu1  ;;  %v1606_v12 = vunpack.c.h.bf16 %v1934_v48 }
 0x225   : > { %v1613_v31 = vadd.f32 %v1597_v55, %v1547_v63  ;;  %v1550_v30 = vadd.f32 %v3140_v13, %v1549_v7 }
 0x226   : > { %1631 = vst.msk [vmem:[%s3148_s11 + $0x30] sm:$0xff] %vm397_vm1, %v1615_v32  ;;  %v1616_v47 = vadd.f32 %v1600_v22, %v1558_v1 }
 0x227   : > { %1629 = vst.msk [vmem:[%s3148_s11 + $0x20] sm:$0xff] %vm397_vm1, %v1613_v31  ;;  %v1614_v62 = vadd.f32 %v1598_v43, %v1550_v30 }
 0x228   : > { %1632 = vst.msk [vmem:[%s3148_s11 + $0x38] sm:$0xff] %vm397_vm1, %v1616_v47 }
 0x229   : > { %1630 = vst.msk [vmem:[%s3148_s11 + $0x28] sm:$0xff] %vm397_vm1, %v1614_v62 }
 0x235   : > { %v1838_v0 = vpop.f32.mrb[4].mxu1 }
 0x236   : > { %v1571_v10 = vadd.f32 %v1838_v0, %v3140_v13  ;;  %v1562_v19 = vpop.f32.mrb[5].mxu1 }
 0x237   : > { %v1563_v57 = vadd.f32 %v3140_v13, %v1562_v19  ;;  %v1839_v54 = vpop.f32.mrb[6].mxu1 }
 0x238   : > { %v1619_v39 = vadd.f32 %v1603_v38, %v1571_v10  ;;  %v1574_v26 = vadd.f32 %v1839_v54, %v3140_v13  ;;  %v1565_v5 = vpop.f32.mrb[7].mxu1 }
 0x239   : > { %v1617_v34 = vadd.f32 %v1601_v36, %v1563_v57  ;;  %v1566_v11 = vadd.f32 %v3140_v13, %v1565_v5 }
 0x23a   : > { %1635 = vst.msk [vmem:[%s3148_s11 + $0x50] sm:$0xff] %vm397_vm1, %v1619_v39  ;;  %v1620_v6 = vadd.f32 %v1604_v15, %v1574_v26 }
 0x23b   : > { %1633 = vst.msk [vmem:[%s3148_s11 + $0x40] sm:$0xff] %vm397_vm1, %v1617_v34  ;;  %v1618_v50 = vadd.f32 %v1602_v28, %v1566_v11 }
 0x23c   : > { %1636 = vst.msk [vmem:[%s3148_s11 + $0x58] sm:$0xff] %vm397_vm1, %v1620_v6 }
 0x23d   : > { %1634 = vst.msk [vmem:[%s3148_s11 + $0x48] sm:$0xff] %vm397_vm1, %v1618_v50 }
 0x244   : > { %v1830_v3 = vpop.f32.mrb[20].mxu0 }
 0x245   : > { %v1539_v56 = vadd.f32 %v1830_v3, %v3140_v13  ;;  %v1530_v46 = vpop.f32.mrb[21].mxu0 }
 0x246   : > { %v1531_v58 = vadd.f32 %v3140_v13, %v1530_v46  ;;  %v1831_v25 = vpop.f32.mrb[22].mxu0 }
 0x247   : > { %v1611_v14 = vadd.f32 %v1595_v20, %v1539_v56  ;;  %v1542_v16 = vadd.f32 %v1831_v25, %v3140_v13  ;;  %v1533_v23 = vpop.f32.mrb[23].mxu0 }
 0x248   : > { %v1609_v37 = vadd.f32 %v1593_v21, %v1531_v58  ;;  %v1534_v17 = vadd.f32 %v3140_v13, %v1533_v23 }
 0x249   : > { %1627 = vst.msk [vmem:[%s3148_s11 + $0x10] sm:$0xff] %vm397_vm1, %v1611_v14  ;;  %v1612_v4 = vadd.f32 %v1596_v40, %v1542_v16 }
 0x24a   : > { %1625 = vst.msk [vmem:[%s3148_s11] sm:$0xff] %vm397_vm1, %v1609_v37  ;;  %v1610_v41 = vadd.f32 %v1594_v52, %v1534_v17 }
 0x24b   : > { %1628 = vst.msk [vmem:[%s3148_s11 + $0x18] sm:$0xff] %vm397_vm1, %v1612_v4 }
 0x24c   : > { %1626 = vst.msk [vmem:[%s3148_s11 + $0x8] sm:$0xff] %vm397_vm1, %v1610_v41 }
 0x24d   : > { %v1842_v51 = vpop.f32.mrb[8].mxu1 }
 0x24e   : > { %v1587_v8 = vadd.f32 %v1842_v51, %v3140_v13  ;;  %v1578_v45 = vpop.f32.mrb[9].mxu1 }
 0x24f   : > { %v1579_v2 = vadd.f32 %v3140_v13, %v1578_v45  ;;  %v1843_v9 = vpop.f32.mrb[10].mxu1 }
 0x250   : > { %v1623_v42 = vadd.f32 %v1607_v61, %v1587_v8  ;;  %v1590_v33 = vadd.f32 %v1843_v9, %v3140_v13  ;;  %v1581_v55 = vpop.f32.mrb[11].mxu1 }
 0x251   : > { %v1621_v49 = vadd.f32 %v1605_v35, %v1579_v2  ;;  %v1582_v24 = vadd.f32 %v3140_v13, %v1581_v55 }
 0x252   : > { %1639 = vst.msk [vmem:[%s3148_s11 + $0x70] sm:$0xff] %vm397_vm1, %v1623_v42  ;;  %v1624_v22 = vadd.f32 %v1608_v18, %v1590_v33 }
 0x253   : > { %1637 = vst.msk [vmem:[%s3148_s11 + $0x60] sm:$0xff] %vm397_vm1, %v1621_v49  ;;  %v1622_v63 = vadd.f32 %v1606_v12, %v1582_v24 }
 0x254   : > { %1640 = vst.msk [vmem:[%s3148_s11 + $0x78] sm:$0xff] %vm397_vm1, %v1624_v22 }
 0x255   : > { %1638 = vst.msk [vmem:[%s3148_s11 + $0x68] sm:$0xff] %vm397_vm1, %v1622_v63 }
 0x256 PF: > { %s17_s28 = sadd.s32 1, %s1973_s28   ;;  %s3447_s24 = smov %s1965_s26 }
 0x257   : > { %p14_p7 = scmp.ge.s32.totalorder %s17_s28, 6   ;;  %s3448_s25 = smov %s1969_s27 }
 0x258   : > { %s3449_s26 = smov %s3452_s29  ;;  %s3450_s27 = smov %s3456_s30 }
 0x259   :  { %16 = sbr.rel (!%p14_p7) target bundleno = 3 (0x3), region = 78 }

</bundles_post_ra>
